<compile_context>
chip_gen: v7x
topology: tpu7x:2x2x1
jax: 0.10.0
libtpu: 0.0.40
codegen_flags: <defaults>
</compile_context>

<pallas_src>
import functools

import jax
import jax.numpy as jnp
from jax.experimental import pallas as pl
from jax.experimental.pallas import tpu as pltpu


def _cross_attention_kernel(x1_ref, x2_ref, wq_ref, wkv_ref, wp_ref, bp_ref,
                            o_ref, q_s, kv_s, ctx_s, *, num_heads, head_dim):
    Bt, N, D = x1_ref.shape
    R = Bt * N
    H, hd = num_heads, head_dim

    # bf16 MXU operands, f32 accumulation (weights already bf16 from wrapper).
    x1 = x1_ref[...].reshape(R, D).astype(jnp.bfloat16)
    x2 = x2_ref[...].reshape(R, D).astype(jnp.bfloat16)

    # Fused projections over all Bt*N rows; scale already folded into wq.
    q_s[...] = jnp.dot(x1, wq_ref[...],
                       preferred_element_type=jnp.float32).astype(jnp.bfloat16)
    kv_s[...] = jnp.dot(x2, wkv_ref[...],
                        preferred_element_type=jnp.float32).astype(jnp.bfloat16)

    # Per-head attention, batched over the Bt batch elements in this block.
    # Head slices are static views of VMEM scratch (no relayout of live values).
    for h in range(H):
        s0 = h * hd
        qh = q_s[:, s0:s0 + hd].reshape(Bt, N, hd)            # bf16 (Bt, N, hd)
        kh = kv_s[:, s0:s0 + hd].reshape(Bt, N, hd)           # bf16 (Bt, N, hd)
        vh = kv_s[:, D + s0:D + s0 + hd].reshape(Bt, N, hd)   # bf16 (Bt, N, hd)

        # Scores: contract last dims (no materialized transpose), f32 result.
        s = jnp.einsum('bqd,bkd->bqk', qh, kh,
                       preferred_element_type=jnp.float32)     # (Bt, N, N)
        s = s - jnp.max(s, axis=-1, keepdims=True)
        p = jnp.exp(s)
        p = p * pl.reciprocal(jnp.sum(p, axis=-1, keepdims=True), approx=True)
        # attn_drop is a no-op at drop prob 0.0 (eval)

        oh = jnp.einsum('bqk,bkd->bqd', p.astype(jnp.bfloat16), vh,
                        preferred_element_type=jnp.float32)    # (Bt, N, hd) f32
        ctx_s[:, s0:s0 + hd] = oh.reshape(R, hd)

    # One dense (R,D)x(D,D) projection instead of H tiny 8-deep matmuls.
    y = jnp.dot(ctx_s[...].astype(jnp.bfloat16), wp_ref[...],
                preferred_element_type=jnp.float32) + bp_ref[...]
    # proj_drop is a no-op at drop prob 0.0 (eval)
    o_ref[...] = y.reshape(Bt, N, D).astype(o_ref.dtype)


def _vmem_capacity_bytes():
    try:
        return int(pltpu.get_tpu_info().vmem_capacity_bytes)
    except Exception:
        return 64 << 20   # conservative fallback (v7x per-core VMEM)


def _pick_batch_block(B, N, D, vmem_budget):
    # Keep at least 2 grid steps when B > 1 so both v7x TensorCores get work
    # (harmless on single-TC v5e/v6e at these step sizes).
    bt_cap = -(-B // 2) if B > 1 else 1
    bt = max(1, min(B, bt_cap, max(1, 1024 // max(N, 1))))

    def step_bytes(b):
        R = b * N
        io = 3 * b * N * D * 4 * 2                          # x1/x2/out f32 blocks, 2x-buffered
        w = 4 * D * D * 2 * 2                               # wq + wkv + wproj bf16, 2x-buffered
        scr = 2 * R * D * 2 + R * 2 * D * 2 + R * D * 4     # q/kv bf16 + ctx f32 scratch
        tmp = 2 * b * N * N * 4 + 4 * R * D                 # per-head scores + transients
        return io + w + scr + tmp

    while bt > 1 and step_bytes(bt) > vmem_budget:
        bt -= 1
    while B % bt != 0:
        bt -= 1
    return bt


def cross_attention(x1, x2, params, *, num_heads, batch_block=None):
    """Forward of Cross_Attention with qkv_bias=False, qk_norm=False (Identity),
    attn_drop=proj_drop=0.0 (eval mode)."""
    assert x1.shape == x2.shape, "The shape of x1 and x2 should be the same"
    B, N, D = x1.shape
    assert D % num_heads == 0, "dim must be divisible by num_heads"
    head_dim = D // num_heads
    scale = head_dim ** (-0.5)

    wq, wk, wv, wp, bp = params
    # Weight prep (free in XLA, outside the kernel): transpose to (in, out),
    # fold the softmax scale into wq, fuse K/V into one lane-dense (D, 2D)
    # weight, cast MXU operands to bf16.
    wq_t = (wq * scale).T.astype(jnp.bfloat16)                          # (D, D)
    wkv_t = jnp.concatenate([wk.T, wv.T], axis=1).astype(jnp.bfloat16)  # (D, 2D)
    wp_t = wp.T.astype(jnp.bfloat16)                                    # (D, D)
    bp2 = bp.reshape(1, D).astype(jnp.float32)

    vmem_cap = _vmem_capacity_bytes()
    vmem_limit = int(min(vmem_cap * 3 // 4, 112 << 20))
    if batch_block is None:
        batch_block = _pick_batch_block(B, N, D, vmem_budget=vmem_limit * 3 // 5)
    Bt = batch_block
    assert B % Bt == 0
    R = Bt * N

    kernel = functools.partial(_cross_attention_kernel,
                               num_heads=num_heads, head_dim=head_dim)

    grid_spec = pltpu.PrefetchScalarGridSpec(
        num_scalar_prefetch=0,
        grid=(B // Bt,),
        in_specs=[
            pl.BlockSpec((Bt, N, D), lambda b: (b, 0, 0)),    # x1 slab
            pl.BlockSpec((Bt, N, D), lambda b: (b, 0, 0)),    # x2 slab
            pl.BlockSpec((D, D), lambda b: (0, 0)),           # wq (scaled, bf16)
            pl.BlockSpec((D, 2 * D), lambda b: (0, 0)),       # wk|wv fused (bf16)
            pl.BlockSpec((D, D), lambda b: (0, 0)),           # wproj (bf16)
            pl.BlockSpec((1, D), lambda b: (0, 0)),           # bproj (f32)
        ],
        out_specs=pl.BlockSpec((Bt, N, D), lambda b: (b, 0, 0)),
        scratch_shapes=[
            pltpu.VMEM((R, D), jnp.bfloat16),        # q
            pltpu.VMEM((R, 2 * D), jnp.bfloat16),    # k|v
            pltpu.VMEM((R, D), jnp.float32),         # assembled head outputs
        ],
    )

    # TODO(synk): for large D, single-buffer the grid-invariant weight blocks
    # with pipeline_mode=pl.Buffered(1) to halve their VMEM cost.
    return pl.pallas_call(
        kernel,
        out_shape=jax.ShapeDtypeStruct((B, N, D), x1.dtype),
        grid_spec=grid_spec,
        compiler_params=pltpu.CompilerParams(
            dimension_semantics=("parallel",),
            vmem_limit_bytes=vmem_limit),
    )(x1, x2, wq_t, wkv_t, wp_t, bp2)


def cross_attention_ref(x1, x2, params, *, num_heads):
    """Pure-JAX f32 reference mirroring the PyTorch forward."""
    wq, wk, wv, wp, bp = params
    B, N, D = x1.shape
    hd = D // num_heads
    scale = hd ** (-0.5)

    q = (x1 @ wq.T).reshape(B, N, num_heads, hd).transpose(0, 2, 1, 3)
    k = (x2 @ wk.T).reshape(B, N, num_heads, hd).transpose(0, 2, 1, 3)
    v = (x2 @ wv.T).reshape(B, N, num_heads, hd).transpose(0, 2, 1, 3)
    attn = jnp.einsum("bhqd,bhkd->bhqk", q, k) * scale
    attn = jax.nn.softmax(attn, axis=-1)
    o = jnp.einsum("bhqk,bhkd->bhqd", attn, v).transpose(0, 2, 1, 3).reshape(B, N, D)
    return o @ wp.T + bp


if __name__ == "__main__":
    B, N, D = 2, 8, 64
    num_heads = 8

    key = jax.random.PRNGKey(0)
    kx1, kx2, kq, kk, kv, kp, kb = jax.random.split(key, 7)

    x1 = jax.random.normal(kx1, (B, N, D), dtype=jnp.float32)
    x2 = jax.random.normal(kx2, (B, N, D), dtype=jnp.float32)

    # Deterministic parameter init (Linear weights are (out, in), like PyTorch).
    init_scale = 1.0 / (D ** 0.5)
    wq = jax.random.uniform(kq, (D, D), jnp.float32, -init_scale, init_scale)
    wk = jax.random.uniform(kk, (D, D), jnp.float32, -init_scale, init_scale)
    wv = jax.random.uniform(kv, (D, D), jnp.float32, -init_scale, init_scale)
    wp = jax.random.uniform(kp, (D, D), jnp.float32, -init_scale, init_scale)
    bp = jax.random.uniform(kb, (D,), jnp.float32, -init_scale, init_scale)
    params = (wq, wk, wv, wp, bp)

    out = cross_attention(x1, x2, params, num_heads=num_heads)
    out = jax.block_until_ready(out)

    ref = cross_attention_ref(x1, x2, params, num_heads=num_heads)
    assert out.shape == (B, N, D)
    # Tolerance accounts for bf16 MXU operands + approx reciprocal; accumulation
    # and softmax statistics remain f32, so drift stays in the 1e-2 range.
    assert jnp.allclose(out, ref, atol=5e-2, rtol=5e-2), (
        "mismatch vs reference: max abs err = "
        f"{float(jnp.max(jnp.abs(out - ref)))}")

    print("KERNEL_OK")
</pallas_src>

<mosaic_0001>
module attributes {stable_mosaic.version = 11 : i64} {
  func.func @_cross_attention_kernel(%arg0: i32, %arg1: memref<1x8x64xf32, #tpu.memory_space<vmem>>, %arg2: memref<1x8x64xf32, #tpu.memory_space<vmem>>, %arg3: memref<64x64xbf16, #tpu.memory_space<vmem>>, %arg4: memref<64x128xbf16, #tpu.memory_space<vmem>>, %arg5: memref<64x64xbf16, #tpu.memory_space<vmem>>, %arg6: memref<1x64xf32, #tpu.memory_space<vmem>>, %arg7: memref<1x8x64xf32, #tpu.memory_space<vmem>>, %arg8: memref<8x64xbf16, #tpu.memory_space<vmem>>, %arg9: memref<8x128xbf16, #tpu.memory_space<vmem>>, %arg10: memref<8x64xf32, #tpu.memory_space<vmem>>) attributes {dimension_semantics = [#tpu.dimension_semantics<parallel>], iteration_bounds = array<i64: 2>, scalar_prefetch = 0 : i64, scratch_operands = 3 : i64, tpu.core_type = #tpu.core_type<tc>, window_params = [{transform_indices = @transform_0, window_bounds = array<i64: 1, 8, 64>}, {transform_indices = @transform_1, window_bounds = array<i64: 1, 8, 64>}, {pipeline_mode = #tpu.pipeline_mode<synchronous>, transform_indices = @transform_2, window_bounds = array<i64: 64, 64>}, {pipeline_mode = #tpu.pipeline_mode<synchronous>, transform_indices = @transform_3, window_bounds = array<i64: 64, 128>}, {pipeline_mode = #tpu.pipeline_mode<synchronous>, transform_indices = @transform_4, window_bounds = array<i64: 64, 64>}, {pipeline_mode = #tpu.pipeline_mode<synchronous>, transform_indices = @transform_5, window_bounds = array<i64: 1, 64>}, {transform_indices = @transform_6, window_bounds = array<i64: 1, 8, 64>}]} {
    %c0 = arith.constant 0 : index
    %c0_0 = arith.constant 0 : index
    %c0_1 = arith.constant 0 : index
    %0 = vector.load %arg1[%c0, %c0_0, %c0_1] : memref<1x8x64xf32, #tpu.memory_space<vmem>>, vector<1x8x64xf32>
    %1 = vector.shape_cast %0 : vector<1x8x64xf32> to vector<8x64xf32>
    %2 = arith.truncf %1 : vector<8x64xf32> to vector<8x64xbf16>
    %c0_2 = arith.constant 0 : index
    %c0_3 = arith.constant 0 : index
    %c0_4 = arith.constant 0 : index
    %3 = vector.load %arg2[%c0_2, %c0_3, %c0_4] : memref<1x8x64xf32, #tpu.memory_space<vmem>>, vector<1x8x64xf32>
    %4 = vector.shape_cast %3 : vector<1x8x64xf32> to vector<8x64xf32>
    %5 = arith.truncf %4 : vector<8x64xf32> to vector<8x64xbf16>
    %c0_5 = arith.constant 0 : index
    %c0_6 = arith.constant 0 : index
    %6 = vector.load %arg3[%c0_5, %c0_6] : memref<64x64xbf16, #tpu.memory_space<vmem>>, vector<64x64xbf16>
    %cst = arith.constant dense<0.000000e+00> : vector<8x64xf32>
    %7 = tpu.matmul %2, %6, %cst {dimension_numbers = #tpu.dot_dimension_numbers<[1], [0], [0], [1], [0, 0, 1, 1], [], []>} : vector<8x64xbf16>, vector<64x64xbf16>, vector<8x64xf32> -> vector<8x64xf32>
    %8 = arith.truncf %7 : vector<8x64xf32> to vector<8x64xbf16>
    %c0_7 = arith.constant 0 : index
    %c0_8 = arith.constant 0 : index
    %9 = vector.load %arg8[%c0_7, %c0_8] : memref<8x64xbf16, #tpu.memory_space<vmem>>, vector<8x64xbf16>
    tpu.vector_store %arg8[%c0_7, %c0_8], %8 {strides = array<i32>} : memref<8x64xbf16, #tpu.memory_space<vmem>>, vector<8x64xbf16>,
    %c0_9 = arith.constant 0 : index
    %c0_10 = arith.constant 0 : index
    %10 = vector.load %arg4[%c0_9, %c0_10] : memref<64x128xbf16, #tpu.memory_space<vmem>>, vector<64x128xbf16>
    %cst_11 = arith.constant dense<0.000000e+00> : vector<8x128xf32>
    %11 = tpu.matmul %5, %10, %cst_11 {dimension_numbers = #tpu.dot_dimension_numbers<[1], [0], [0], [1], [0, 0, 1, 1], [], []>} : vector<8x64xbf16>, vector<64x128xbf16>, vector<8x128xf32> -> vector<8x128xf32>
    %12 = arith.truncf %11 : vector<8x128xf32> to vector<8x128xbf16>
    %c0_12 = arith.constant 0 : index
    %c0_13 = arith.constant 0 : index
    %13 = vector.load %arg9[%c0_12, %c0_13] : memref<8x128xbf16, #tpu.memory_space<vmem>>, vector<8x128xbf16>
    tpu.vector_store %arg9[%c0_12, %c0_13], %12 {strides = array<i32>} : memref<8x128xbf16, #tpu.memory_space<vmem>>, vector<8x128xbf16>,
    %c0_14 = arith.constant 0 : index
    %c0_15 = arith.constant 0 : index
    %14 = vector.load %arg8[%c0_14, %c0_15] : memref<8x64xbf16, #tpu.memory_space<vmem>>, vector<8x8xbf16>
    %15 = vector.shape_cast %14 : vector<8x8xbf16> to vector<1x8x8xbf16>
    %c0_16 = arith.constant 0 : index
    %c0_17 = arith.constant 0 : index
    %16 = vector.load %arg9[%c0_16, %c0_17] : memref<8x128xbf16, #tpu.memory_space<vmem>>, vector<8x8xbf16>
    %17 = vector.shape_cast %16 : vector<8x8xbf16> to vector<1x8x8xbf16>
    %c0_18 = arith.constant 0 : index
    %c64 = arith.constant 64 : index
    %18 = vector.load %arg9[%c0_18, %c64] : memref<8x128xbf16, #tpu.memory_space<vmem>>, vector<8x8xbf16>
    %19 = vector.shape_cast %18 : vector<8x8xbf16> to vector<1x8x8xbf16>
    "tpu.trace_start"() <{level = 10 : i32, message = "bqd,bkd->bqk"}> : () -> ()
    %cst_19 = arith.constant dense<0.000000e+00> : vector<1x8x8xf32>
    %20 = tpu.matmul %15, %17, %cst_19 {dimension_numbers = #tpu.dot_dimension_numbers<[2], [2], [1], [1], [0, 0, 0, 1, 1, 1], [0], [0]>} : vector<1x8x8xbf16>, vector<1x8x8xbf16>, vector<1x8x8xf32> -> vector<1x8x8xf32>
    "tpu.trace_stop"() : () -> ()
    %cst_20 = arith.constant dense<0xFF800000> : vector<1x8xf32>
    %21 = vector.multi_reduction <maximumf>, %20, %cst_20 [2] : vector<1x8x8xf32> to vector<1x8xf32>
    %22 = vector.shape_cast %21 : vector<1x8xf32> to vector<1x8x1xf32>
    %23 = vector.broadcast %22 : vector<1x8x1xf32> to vector<1x8x8xf32>
    %24 = arith.subf %20, %23 : vector<1x8x8xf32>
    %25 = math.exp %24 : vector<1x8x8xf32>
    %cst_21 = arith.constant dense<0.000000e+00> : vector<1x8xf32>
    %26 = vector.multi_reduction <add>, %25, %cst_21 [2] : vector<1x8x8xf32> to vector<1x8xf32>
    %27 = vector.shape_cast %26 : vector<1x8xf32> to vector<1x8x1xf32>
    %28 = tpu.reciprocal %27 {approx = true} : vector<1x8x1xf32> -> vector<1x8x1xf32>
    %29 = vector.broadcast %28 : vector<1x8x1xf32> to vector<1x8x8xf32>
    %30 = arith.mulf %25, %29 : vector<1x8x8xf32>
    %31 = arith.truncf %30 : vector<1x8x8xf32> to vector<1x8x8xbf16>
    "tpu.trace_start"() <{level = 10 : i32, message = "bqk,bkd->bqd"}> : () -> ()
    %cst_22 = arith.constant dense<0.000000e+00> : vector<1x8x8xf32>
    %32 = tpu.matmul %31, %19, %cst_22 {dimension_numbers = #tpu.dot_dimension_numbers<[2], [1], [1], [2], [0, 0, 0, 1, 1, 2], [0], [0]>} : vector<1x8x8xbf16>, vector<1x8x8xbf16>, vector<1x8x8xf32> -> vector<1x8x8xf32>
    "tpu.trace_stop"() : () -> ()
    %33 = vector.shape_cast %32 : vector<1x8x8xf32> to vector<8x8xf32>
    %c0_23 = arith.constant 0 : index
    %c0_24 = arith.constant 0 : index
    %34 = vector.load %arg10[%c0_23, %c0_24] : memref<8x64xf32, #tpu.memory_space<vmem>>, vector<8x8xf32>
    tpu.vector_store %arg10[%c0_23, %c0_24], %33 {strides = array<i32>} : memref<8x64xf32, #tpu.memory_space<vmem>>, vector<8x8xf32>,
    %c0_25 = arith.constant 0 : index
    %c8 = arith.constant 8 : index
    %35 = vector.load %arg8[%c0_25, %c8] : memref<8x64xbf16, #tpu.memory_space<vmem>>, vector<8x8xbf16>
    %36 = vector.shape_cast %35 : vector<8x8xbf16> to vector<1x8x8xbf16>
    %c0_26 = arith.constant 0 : index
    %c8_27 = arith.constant 8 : index
    %37 = vector.load %arg9[%c0_26, %c8_27] : memref<8x128xbf16, #tpu.memory_space<vmem>>, vector<8x8xbf16>
    %38 = vector.shape_cast %37 : vector<8x8xbf16> to vector<1x8x8xbf16>
    %c0_28 = arith.constant 0 : index
    %c72 = arith.constant 72 : index
    %39 = vector.load %arg9[%c0_28, %c72] : memref<8x128xbf16, #tpu.memory_space<vmem>>, vector<8x8xbf16>
    %40 = vector.shape_cast %39 : vector<8x8xbf16> to vector<1x8x8xbf16>
    "tpu.trace_start"() <{level = 10 : i32, message = "bqd,bkd->bqk"}> : () -> ()
    %cst_29 = arith.constant dense<0.000000e+00> : vector<1x8x8xf32>
    %41 = tpu.matmul %36, %38, %cst_29 {dimension_numbers = #tpu.dot_dimension_numbers<[2], [2], [1], [1], [0, 0, 0, 1, 1, 1], [0], [0]>} : vector<1x8x8xbf16>, vector<1x8x8xbf16>, vector<1x8x8xf32> -> vector<1x8x8xf32>
    "tpu.trace_stop"() : () -> ()
    %cst_30 = arith.constant dense<0xFF800000> : vector<1x8xf32>
    %42 = vector.multi_reduction <maximumf>, %41, %cst_30 [2] : vector<1x8x8xf32> to vector<1x8xf32>
    %43 = vector.shape_cast %42 : vector<1x8xf32> to vector<1x8x1xf32>
    %44 = vector.broadcast %43 : vector<1x8x1xf32> to vector<1x8x8xf32>
    %45 = arith.subf %41, %44 : vector<1x8x8xf32>
    %46 = math.exp %45 : vector<1x8x8xf32>
    %cst_31 = arith.constant dense<0.000000e+00> : vector<1x8xf32>
    %47 = vector.multi_reduction <add>, %46, %cst_31 [2] : vector<1x8x8xf32> to vector<1x8xf32>
    %48 = vector.shape_cast %47 : vector<1x8xf32> to vector<1x8x1xf32>
    %49 = tpu.reciprocal %48 {approx = true} : vector<1x8x1xf32> -> vector<1x8x1xf32>
    %50 = vector.broadcast %49 : vector<1x8x1xf32> to vector<1x8x8xf32>
    %51 = arith.mulf %46, %50 : vector<1x8x8xf32>
    %52 = arith.truncf %51 : vector<1x8x8xf32> to vector<1x8x8xbf16>
    "tpu.trace_start"() <{level = 10 : i32, message = "bqk,bkd->bqd"}> : () -> ()
    %cst_32 = arith.constant dense<0.000000e+00> : vector<1x8x8xf32>
    %53 = tpu.matmul %52, %40, %cst_32 {dimension_numbers = #tpu.dot_dimension_numbers<[2], [1], [1], [2], [0, 0, 0, 1, 1, 2], [0], [0]>} : vector<1x8x8xbf16>, vector<1x8x8xbf16>, vector<1x8x8xf32> -> vector<1x8x8xf32>
    "tpu.trace_stop"() : () -> ()
    %54 = vector.shape_cast %53 : vector<1x8x8xf32> to vector<8x8xf32>
    %c0_33 = arith.constant 0 : index
    %c8_34 = arith.constant 8 : index
    %55 = vector.load %arg10[%c0_33, %c8_34] : memref<8x64xf32, #tpu.memory_space<vmem>>, vector<8x8xf32>
    tpu.vector_store %arg10[%c0_33, %c8_34], %54 {strides = array<i32>} : memref<8x64xf32, #tpu.memory_space<vmem>>, vector<8x8xf32>,
    %c0_35 = arith.constant 0 : index
    %c16 = arith.constant 16 : index
    %56 = vector.load %arg8[%c0_35, %c16] : memref<8x64xbf16, #tpu.memory_space<vmem>>, vector<8x8xbf16>
    %57 = vector.shape_cast %56 : vector<8x8xbf16> to vector<1x8x8xbf16>
    %c0_36 = arith.constant 0 : index
    %c16_37 = arith.constant 16 : index
    %58 = vector.load %arg9[%c0_36, %c16_37] : memref<8x128xbf16, #tpu.memory_space<vmem>>, vector<8x8xbf16>
    %59 = vector.shape_cast %58 : vector<8x8xbf16> to vector<1x8x8xbf16>
    %c0_38 = arith.constant 0 : index
    %c80 = arith.constant 80 : index
    %60 = vector.load %arg9[%c0_38, %c80] : memref<8x128xbf16, #tpu.memory_space<vmem>>, vector<8x8xbf16>
    %61 = vector.shape_cast %60 : vector<8x8xbf16> to vector<1x8x8xbf16>
    "tpu.trace_start"() <{level = 10 : i32, message = "bqd,bkd->bqk"}> : () -> ()
    %cst_39 = arith.constant dense<0.000000e+00> : vector<1x8x8xf32>
    %62 = tpu.matmul %57, %59, %cst_39 {dimension_numbers = #tpu.dot_dimension_numbers<[2], [2], [1], [1], [0, 0, 0, 1, 1, 1], [0], [0]>} : vector<1x8x8xbf16>, vector<1x8x8xbf16>, vector<1x8x8xf32> -> vector<1x8x8xf32>
    "tpu.trace_stop"() : () -> ()
    %cst_40 = arith.constant dense<0xFF800000> : vector<1x8xf32>
    %63 = vector.multi_reduction <maximumf>, %62, %cst_40 [2] : vector<1x8x8xf32> to vector<1x8xf32>
    %64 = vector.shape_cast %63 : vector<1x8xf32> to vector<1x8x1xf32>
    %65 = vector.broadcast %64 : vector<1x8x1xf32> to vector<1x8x8xf32>
    %66 = arith.subf %62, %65 : vector<1x8x8xf32>
    %67 = math.exp %66 : vector<1x8x8xf32>
    %cst_41 = arith.constant dense<0.000000e+00> : vector<1x8xf32>
    %68 = vector.multi_reduction <add>, %67, %cst_41 [2] : vector<1x8x8xf32> to vector<1x8xf32>
    %69 = vector.shape_cast %68 : vector<1x8xf32> to vector<1x8x1xf32>
    %70 = tpu.reciprocal %69 {approx = true} : vector<1x8x1xf32> -> vector<1x8x1xf32>
    %71 = vector.broadcast %70 : vector<1x8x1xf32> to vector<1x8x8xf32>
    %72 = arith.mulf %67, %71 : vector<1x8x8xf32>
    %73 = arith.truncf %72 : vector<1x8x8xf32> to vector<1x8x8xbf16>
    "tpu.trace_start"() <{level = 10 : i32, message = "bqk,bkd->bqd"}> : () -> ()
    %cst_42 = arith.constant dense<0.000000e+00> : vector<1x8x8xf32>
    %74 = tpu.matmul %73, %61, %cst_42 {dimension_numbers = #tpu.dot_dimension_numbers<[2], [1], [1], [2], [0, 0, 0, 1, 1, 2], [0], [0]>} : vector<1x8x8xbf16>, vector<1x8x8xbf16>, vector<1x8x8xf32> -> vector<1x8x8xf32>
    "tpu.trace_stop"() : () -> ()
    %75 = vector.shape_cast %74 : vector<1x8x8xf32> to vector<8x8xf32>
    %c0_43 = arith.constant 0 : index
    %c16_44 = arith.constant 16 : index
    %76 = vector.load %arg10[%c0_43, %c16_44] : memref<8x64xf32, #tpu.memory_space<vmem>>, vector<8x8xf32>
    tpu.vector_store %arg10[%c0_43, %c16_44], %75 {strides = array<i32>} : memref<8x64xf32, #tpu.memory_space<vmem>>, vector<8x8xf32>,
    %c0_45 = arith.constant 0 : index
    %c24 = arith.constant 24 : index
    %77 = vector.load %arg8[%c0_45, %c24] : memref<8x64xbf16, #tpu.memory_space<vmem>>, vector<8x8xbf16>
    %78 = vector.shape_cast %77 : vector<8x8xbf16> to vector<1x8x8xbf16>
    %c0_46 = arith.constant 0 : index
    %c24_47 = arith.constant 24 : index
    %79 = vector.load %arg9[%c0_46, %c24_47] : memref<8x128xbf16, #tpu.memory_space<vmem>>, vector<8x8xbf16>
    %80 = vector.shape_cast %79 : vector<8x8xbf16> to vector<1x8x8xbf16>
    %c0_48 = arith.constant 0 : index
    %c88 = arith.constant 88 : index
    %81 = vector.load %arg9[%c0_48, %c88] : memref<8x128xbf16, #tpu.memory_space<vmem>>, vector<8x8xbf16>
    %82 = vector.shape_cast %81 : vector<8x8xbf16> to vector<1x8x8xbf16>
    "tpu.trace_start"() <{level = 10 : i32, message = "bqd,bkd->bqk"}> : () -> ()
    %cst_49 = arith.constant dense<0.000000e+00> : vector<1x8x8xf32>
    %83 = tpu.matmul %78, %80, %cst_49 {dimension_numbers = #tpu.dot_dimension_numbers<[2], [2], [1], [1], [0, 0, 0, 1, 1, 1], [0], [0]>} : vector<1x8x8xbf16>, vector<1x8x8xbf16>, vector<1x8x8xf32> -> vector<1x8x8xf32>
    "tpu.trace_stop"() : () -> ()
    %cst_50 = arith.constant dense<0xFF800000> : vector<1x8xf32>
    %84 = vector.multi_reduction <maximumf>, %83, %cst_50 [2] : vector<1x8x8xf32> to vector<1x8xf32>
    %85 = vector.shape_cast %84 : vector<1x8xf32> to vector<1x8x1xf32>
    %86 = vector.broadcast %85 : vector<1x8x1xf32> to vector<1x8x8xf32>
    %87 = arith.subf %83, %86 : vector<1x8x8xf32>
    %88 = math.exp %87 : vector<1x8x8xf32>
    %cst_51 = arith.constant dense<0.000000e+00> : vector<1x8xf32>
    %89 = vector.multi_reduction <add>, %88, %cst_51 [2] : vector<1x8x8xf32> to vector<1x8xf32>
    %90 = vector.shape_cast %89 : vector<1x8xf32> to vector<1x8x1xf32>
    %91 = tpu.reciprocal %90 {approx = true} : vector<1x8x1xf32> -> vector<1x8x1xf32>
    %92 = vector.broadcast %91 : vector<1x8x1xf32> to vector<1x8x8xf32>
    %93 = arith.mulf %88, %92 : vector<1x8x8xf32>
    %94 = arith.truncf %93 : vector<1x8x8xf32> to vector<1x8x8xbf16>
    "tpu.trace_start"() <{level = 10 : i32, message = "bqk,bkd->bqd"}> : () -> ()
    %cst_52 = arith.constant dense<0.000000e+00> : vector<1x8x8xf32>
    %95 = tpu.matmul %94, %82, %cst_52 {dimension_numbers = #tpu.dot_dimension_numbers<[2], [1], [1], [2], [0, 0, 0, 1, 1, 2], [0], [0]>} : vector<1x8x8xbf16>, vector<1x8x8xbf16>, vector<1x8x8xf32> -> vector<1x8x8xf32>
    "tpu.trace_stop"() : () -> ()
    %96 = vector.shape_cast %95 : vector<1x8x8xf32> to vector<8x8xf32>
    %c0_53 = arith.constant 0 : index
    %c24_54 = arith.constant 24 : index
    %97 = vector.load %arg10[%c0_53, %c24_54] : memref<8x64xf32, #tpu.memory_space<vmem>>, vector<8x8xf32>
    tpu.vector_store %arg10[%c0_53, %c24_54], %96 {strides = array<i32>} : memref<8x64xf32, #tpu.memory_space<vmem>>, vector<8x8xf32>,
    %c0_55 = arith.constant 0 : index
    %c32 = arith.constant 32 : index
    %98 = vector.load %arg8[%c0_55, %c32] : memref<8x64xbf16, #tpu.memory_space<vmem>>, vector<8x8xbf16>
    %99 = vector.shape_cast %98 : vector<8x8xbf16> to vector<1x8x8xbf16>
    %c0_56 = arith.constant 0 : index
    %c32_57 = arith.constant 32 : index
    %100 = vector.load %arg9[%c0_56, %c32_57] : memref<8x128xbf16, #tpu.memory_space<vmem>>, vector<8x8xbf16>
    %101 = vector.shape_cast %100 : vector<8x8xbf16> to vector<1x8x8xbf16>
    %c0_58 = arith.constant 0 : index
    %c96 = arith.constant 96 : index
    %102 = vector.load %arg9[%c0_58, %c96] : memref<8x128xbf16, #tpu.memory_space<vmem>>, vector<8x8xbf16>
    %103 = vector.shape_cast %102 : vector<8x8xbf16> to vector<1x8x8xbf16>
    "tpu.trace_start"() <{level = 10 : i32, message = "bqd,bkd->bqk"}> : () -> ()
    %cst_59 = arith.constant dense<0.000000e+00> : vector<1x8x8xf32>
    %104 = tpu.matmul %99, %101, %cst_59 {dimension_numbers = #tpu.dot_dimension_numbers<[2], [2], [1], [1], [0, 0, 0, 1, 1, 1], [0], [0]>} : vector<1x8x8xbf16>, vector<1x8x8xbf16>, vector<1x8x8xf32> -> vector<1x8x8xf32>
    "tpu.trace_stop"() : () -> ()
    %cst_60 = arith.constant dense<0xFF800000> : vector<1x8xf32>
    %105 = vector.multi_reduction <maximumf>, %104, %cst_60 [2] : vector<1x8x8xf32> to vector<1x8xf32>
    %106 = vector.shape_cast %105 : vector<1x8xf32> to vector<1x8x1xf32>
    %107 = vector.broadcast %106 : vector<1x8x1xf32> to vector<1x8x8xf32>
    %108 = arith.subf %104, %107 : vector<1x8x8xf32>
    %109 = math.exp %108 : vector<1x8x8xf32>
    %cst_61 = arith.constant dense<0.000000e+00> : vector<1x8xf32>
    %110 = vector.multi_reduction <add>, %109, %cst_61 [2] : vector<1x8x8xf32> to vector<1x8xf32>
    %111 = vector.shape_cast %110 : vector<1x8xf32> to vector<1x8x1xf32>
    %112 = tpu.reciprocal %111 {approx = true} : vector<1x8x1xf32> -> vector<1x8x1xf32>
    %113 = vector.broadcast %112 : vector<1x8x1xf32> to vector<1x8x8xf32>
    %114 = arith.mulf %109, %113 : vector<1x8x8xf32>
    %115 = arith.truncf %114 : vector<1x8x8xf32> to vector<1x8x8xbf16>
    "tpu.trace_start"() <{level = 10 : i32, message = "bqk,bkd->bqd"}> : () -> ()
    %cst_62 = arith.constant dense<0.000000e+00> : vector<1x8x8xf32>
    %116 = tpu.matmul %115, %103, %cst_62 {dimension_numbers = #tpu.dot_dimension_numbers<[2], [1], [1], [2], [0, 0, 0, 1, 1, 2], [0], [0]>} : vector<1x8x8xbf16>, vector<1x8x8xbf16>, vector<1x8x8xf32> -> vector<1x8x8xf32>
    "tpu.trace_stop"() : () -> ()
    %117 = vector.shape_cast %116 : vector<1x8x8xf32> to vector<8x8xf32>
    %c0_63 = arith.constant 0 : index
    %c32_64 = arith.constant 32 : index
    %118 = vector.load %arg10[%c0_63, %c32_64] : memref<8x64xf32, #tpu.memory_space<vmem>>, vector<8x8xf32>
    tpu.vector_store %arg10[%c0_63, %c32_64], %117 {strides = array<i32>} : memref<8x64xf32, #tpu.memory_space<vmem>>, vector<8x8xf32>,
    %c0_65 = arith.constant 0 : index
    %c40 = arith.constant 40 : index
    %119 = vector.load %arg8[%c0_65, %c40] : memref<8x64xbf16, #tpu.memory_space<vmem>>, vector<8x8xbf16>
    %120 = vector.shape_cast %119 : vector<8x8xbf16> to vector<1x8x8xbf16>
    %c0_66 = arith.constant 0 : index
    %c40_67 = arith.constant 40 : index
    %121 = vector.load %arg9[%c0_66, %c40_67] : memref<8x128xbf16, #tpu.memory_space<vmem>>, vector<8x8xbf16>
    %122 = vector.shape_cast %121 : vector<8x8xbf16> to vector<1x8x8xbf16>
    %c0_68 = arith.constant 0 : index
    %c104 = arith.constant 104 : index
    %123 = vector.load %arg9[%c0_68, %c104] : memref<8x128xbf16, #tpu.memory_space<vmem>>, vector<8x8xbf16>
    %124 = vector.shape_cast %123 : vector<8x8xbf16> to vector<1x8x8xbf16>
    "tpu.trace_start"() <{level = 10 : i32, message = "bqd,bkd->bqk"}> : () -> ()
    %cst_69 = arith.constant dense<0.000000e+00> : vector<1x8x8xf32>
    %125 = tpu.matmul %120, %122, %cst_69 {dimension_numbers = #tpu.dot_dimension_numbers<[2], [2], [1], [1], [0, 0, 0, 1, 1, 1], [0], [0]>} : vector<1x8x8xbf16>, vector<1x8x8xbf16>, vector<1x8x8xf32> -> vector<1x8x8xf32>
    "tpu.trace_stop"() : () -> ()
    %cst_70 = arith.constant dense<0xFF800000> : vector<1x8xf32>
    %126 = vector.multi_reduction <maximumf>, %125, %cst_70 [2] : vector<1x8x8xf32> to vector<1x8xf32>
    %127 = vector.shape_cast %126 : vector<1x8xf32> to vector<1x8x1xf32>
    %128 = vector.broadcast %127 : vector<1x8x1xf32> to vector<1x8x8xf32>
    %129 = arith.subf %125, %128 : vector<1x8x8xf32>
    %130 = math.exp %129 : vector<1x8x8xf32>
    %cst_71 = arith.constant dense<0.000000e+00> : vector<1x8xf32>
    %131 = vector.multi_reduction <add>, %130, %cst_71 [2] : vector<1x8x8xf32> to vector<1x8xf32>
    %132 = vector.shape_cast %131 : vector<1x8xf32> to vector<1x8x1xf32>
    %133 = tpu.reciprocal %132 {approx = true} : vector<1x8x1xf32> -> vector<1x8x1xf32>
    %134 = vector.broadcast %133 : vector<1x8x1xf32> to vector<1x8x8xf32>
    %135 = arith.mulf %130, %134 : vector<1x8x8xf32>
    %136 = arith.truncf %135 : vector<1x8x8xf32> to vector<1x8x8xbf16>
    "tpu.trace_start"() <{level = 10 : i32, message = "bqk,bkd->bqd"}> : () -> ()
    %cst_72 = arith.constant dense<0.000000e+00> : vector<1x8x8xf32>
    %137 = tpu.matmul %136, %124, %cst_72 {dimension_numbers = #tpu.dot_dimension_numbers<[2], [1], [1], [2], [0, 0, 0, 1, 1, 2], [0], [0]>} : vector<1x8x8xbf16>, vector<1x8x8xbf16>, vector<1x8x8xf32> -> vector<1x8x8xf32>
    "tpu.trace_stop"() : () -> ()
    %138 = vector.shape_cast %137 : vector<1x8x8xf32> to vector<8x8xf32>
    %c0_73 = arith.constant 0 : index
    %c40_74 = arith.constant 40 : index
    %139 = vector.load %arg10[%c0_73, %c40_74] : memref<8x64xf32, #tpu.memory_space<vmem>>, vector<8x8xf32>
    tpu.vector_store %arg10[%c0_73, %c40_74], %138 {strides = array<i32>} : memref<8x64xf32, #tpu.memory_space<vmem>>, vector<8x8xf32>,
    %c0_75 = arith.constant 0 : index
    %c48 = arith.constant 48 : index
    %140 = vector.load %arg8[%c0_75, %c48] : memref<8x64xbf16, #tpu.memory_space<vmem>>, vector<8x8xbf16>
    %141 = vector.shape_cast %140 : vector<8x8xbf16> to vector<1x8x8xbf16>
    %c0_76 = arith.constant 0 : index
    %c48_77 = arith.constant 48 : index
    %142 = vector.load %arg9[%c0_76, %c48_77] : memref<8x128xbf16, #tpu.memory_space<vmem>>, vector<8x8xbf16>
    %143 = vector.shape_cast %142 : vector<8x8xbf16> to vector<1x8x8xbf16>
    %c0_78 = arith.constant 0 : index
    %c112 = arith.constant 112 : index
    %144 = vector.load %arg9[%c0_78, %c112] : memref<8x128xbf16, #tpu.memory_space<vmem>>, vector<8x8xbf16>
    %145 = vector.shape_cast %144 : vector<8x8xbf16> to vector<1x8x8xbf16>
    "tpu.trace_start"() <{level = 10 : i32, message = "bqd,bkd->bqk"}> : () -> ()
    %cst_79 = arith.constant dense<0.000000e+00> : vector<1x8x8xf32>
    %146 = tpu.matmul %141, %143, %cst_79 {dimension_numbers = #tpu.dot_dimension_numbers<[2], [2], [1], [1], [0, 0, 0, 1, 1, 1], [0], [0]>} : vector<1x8x8xbf16>, vector<1x8x8xbf16>, vector<1x8x8xf32> -> vector<1x8x8xf32>
    "tpu.trace_stop"() : () -> ()
    %cst_80 = arith.constant dense<0xFF800000> : vector<1x8xf32>
    %147 = vector.multi_reduction <maximumf>, %146, %cst_80 [2] : vector<1x8x8xf32> to vector<1x8xf32>
    %148 = vector.shape_cast %147 : vector<1x8xf32> to vector<1x8x1xf32>
    %149 = vector.broadcast %148 : vector<1x8x1xf32> to vector<1x8x8xf32>
    %150 = arith.subf %146, %149 : vector<1x8x8xf32>
    %151 = math.exp %150 : vector<1x8x8xf32>
    %cst_81 = arith.constant dense<0.000000e+00> : vector<1x8xf32>
    %152 = vector.multi_reduction <add>, %151, %cst_81 [2] : vector<1x8x8xf32> to vector<1x8xf32>
    %153 = vector.shape_cast %152 : vector<1x8xf32> to vector<1x8x1xf32>
    %154 = tpu.reciprocal %153 {approx = true} : vector<1x8x1xf32> -> vector<1x8x1xf32>
    %155 = vector.broadcast %154 : vector<1x8x1xf32> to vector<1x8x8xf32>
    %156 = arith.mulf %151, %155 : vector<1x8x8xf32>
    %157 = arith.truncf %156 : vector<1x8x8xf32> to vector<1x8x8xbf16>
    "tpu.trace_start"() <{level = 10 : i32, message = "bqk,bkd->bqd"}> : () -> ()
    %cst_82 = arith.constant dense<0.000000e+00> : vector<1x8x8xf32>
    %158 = tpu.matmul %157, %145, %cst_82 {dimension_numbers = #tpu.dot_dimension_numbers<[2], [1], [1], [2], [0, 0, 0, 1, 1, 2], [0], [0]>} : vector<1x8x8xbf16>, vector<1x8x8xbf16>, vector<1x8x8xf32> -> vector<1x8x8xf32>
    "tpu.trace_stop"() : () -> ()
    %159 = vector.shape_cast %158 : vector<1x8x8xf32> to vector<8x8xf32>
    %c0_83 = arith.constant 0 : index
    %c48_84 = arith.constant 48 : index
    %160 = vector.load %arg10[%c0_83, %c48_84] : memref<8x64xf32, #tpu.memory_space<vmem>>, vector<8x8xf32>
    tpu.vector_store %arg10[%c0_83, %c48_84], %159 {strides = array<i32>} : memref<8x64xf32, #tpu.memory_space<vmem>>, vector<8x8xf32>,
    %c0_85 = arith.constant 0 : index
    %c56 = arith.constant 56 : index
    %161 = vector.load %arg8[%c0_85, %c56] : memref<8x64xbf16, #tpu.memory_space<vmem>>, vector<8x8xbf16>
    %162 = vector.shape_cast %161 : vector<8x8xbf16> to vector<1x8x8xbf16>
    %c0_86 = arith.constant 0 : index
    %c56_87 = arith.constant 56 : index
    %163 = vector.load %arg9[%c0_86, %c56_87] : memref<8x128xbf16, #tpu.memory_space<vmem>>, vector<8x8xbf16>
    %164 = vector.shape_cast %163 : vector<8x8xbf16> to vector<1x8x8xbf16>
    %c0_88 = arith.constant 0 : index
    %c120 = arith.constant 120 : index
    %165 = vector.load %arg9[%c0_88, %c120] : memref<8x128xbf16, #tpu.memory_space<vmem>>, vector<8x8xbf16>
    %166 = vector.shape_cast %165 : vector<8x8xbf16> to vector<1x8x8xbf16>
    "tpu.trace_start"() <{level = 10 : i32, message = "bqd,bkd->bqk"}> : () -> ()
    %cst_89 = arith.constant dense<0.000000e+00> : vector<1x8x8xf32>
    %167 = tpu.matmul %162, %164, %cst_89 {dimension_numbers = #tpu.dot_dimension_numbers<[2], [2], [1], [1], [0, 0, 0, 1, 1, 1], [0], [0]>} : vector<1x8x8xbf16>, vector<1x8x8xbf16>, vector<1x8x8xf32> -> vector<1x8x8xf32>
    "tpu.trace_stop"() : () -> ()
    %cst_90 = arith.constant dense<0xFF800000> : vector<1x8xf32>
    %168 = vector.multi_reduction <maximumf>, %167, %cst_90 [2] : vector<1x8x8xf32> to vector<1x8xf32>
    %169 = vector.shape_cast %168 : vector<1x8xf32> to vector<1x8x1xf32>
    %170 = vector.broadcast %169 : vector<1x8x1xf32> to vector<1x8x8xf32>
    %171 = arith.subf %167, %170 : vector<1x8x8xf32>
    %172 = math.exp %171 : vector<1x8x8xf32>
    %cst_91 = arith.constant dense<0.000000e+00> : vector<1x8xf32>
    %173 = vector.multi_reduction <add>, %172, %cst_91 [2] : vector<1x8x8xf32> to vector<1x8xf32>
    %174 = vector.shape_cast %173 : vector<1x8xf32> to vector<1x8x1xf32>
    %175 = tpu.reciprocal %174 {approx = true} : vector<1x8x1xf32> -> vector<1x8x1xf32>
    %176 = vector.broadcast %175 : vector<1x8x1xf32> to vector<1x8x8xf32>
    %177 = arith.mulf %172, %176 : vector<1x8x8xf32>
    %178 = arith.truncf %177 : vector<1x8x8xf32> to vector<1x8x8xbf16>
    "tpu.trace_start"() <{level = 10 : i32, message = "bqk,bkd->bqd"}> : () -> ()
    %cst_92 = arith.constant dense<0.000000e+00> : vector<1x8x8xf32>
    %179 = tpu.matmul %178, %166, %cst_92 {dimension_numbers = #tpu.dot_dimension_numbers<[2], [1], [1], [2], [0, 0, 0, 1, 1, 2], [0], [0]>} : vector<1x8x8xbf16>, vector<1x8x8xbf16>, vector<1x8x8xf32> -> vector<1x8x8xf32>
    "tpu.trace_stop"() : () -> ()
    %180 = vector.shape_cast %179 : vector<1x8x8xf32> to vector<8x8xf32>
    %c0_93 = arith.constant 0 : index
    %c56_94 = arith.constant 56 : index
    %181 = vector.load %arg10[%c0_93, %c56_94] : memref<8x64xf32, #tpu.memory_space<vmem>>, vector<8x8xf32>
    tpu.vector_store %arg10[%c0_93, %c56_94], %180 {strides = array<i32>} : memref<8x64xf32, #tpu.memory_space<vmem>>, vector<8x8xf32>,
    %c0_95 = arith.constant 0 : index
    %c0_96 = arith.constant 0 : index
    %182 = vector.load %arg10[%c0_95, %c0_96] : memref<8x64xf32, #tpu.memory_space<vmem>>, vector<8x64xf32>
    %183 = arith.truncf %182 : vector<8x64xf32> to vector<8x64xbf16>
    %c0_97 = arith.constant 0 : index
    %c0_98 = arith.constant 0 : index
    %184 = vector.load %arg5[%c0_97, %c0_98] : memref<64x64xbf16, #tpu.memory_space<vmem>>, vector<64x64xbf16>
    %cst_99 = arith.constant dense<0.000000e+00> : vector<8x64xf32>
    %185 = tpu.matmul %183, %184, %cst_99 {dimension_numbers = #tpu.dot_dimension_numbers<[1], [0], [0], [1], [0, 0, 1, 1], [], []>} : vector<8x64xbf16>, vector<64x64xbf16>, vector<8x64xf32> -> vector<8x64xf32>
    %c0_100 = arith.constant 0 : index
    %c0_101 = arith.constant 0 : index
    %186 = vector.load %arg6[%c0_100, %c0_101] : memref<1x64xf32, #tpu.memory_space<vmem>>, vector<1x64xf32>
    %187 = vector.broadcast %186 : vector<1x64xf32> to vector<8x64xf32>
    %188 = arith.addf %185, %187 : vector<8x64xf32>
    %189 = vector.shape_cast %188 : vector<8x64xf32> to vector<1x8x64xf32>
    %c0_102 = arith.constant 0 : index
    %c0_103 = arith.constant 0 : index
    %c0_104 = arith.constant 0 : index
    %190 = vector.load %arg7[%c0_102, %c0_103, %c0_104] : memref<1x8x64xf32, #tpu.memory_space<vmem>>, vector<1x8x64xf32>
    tpu.vector_store %arg7[%c0_102, %c0_103, %c0_104], %189 {strides = array<i32>} : memref<1x8x64xf32, #tpu.memory_space<vmem>>, vector<1x8x64xf32>,
    return
  }
  func.func @transform_0(%arg0: i32) -> (i32, i32, i32) {
    %c0_i32 = arith.constant 0 : i32
    %c0_i32_0 = arith.constant 0 : i32
    %c0_i32_1 = arith.constant 0 : i32
    return %arg0, %c0_i32, %c0_i32_0 : i32, i32, i32
  }
  func.func @transform_1(%arg0: i32) -> (i32, i32, i32) {
    %c0_i32 = arith.constant 0 : i32
    %c0_i32_0 = arith.constant 0 : i32
    %c0_i32_1 = arith.constant 0 : i32
    return %arg0, %c0_i32, %c0_i32_0 : i32, i32, i32
  }
  func.func @transform_2(%arg0: i32) -> (i32, i32) {
    %c0_i32 = arith.constant 0 : i32
    %c0_i32_0 = arith.constant 0 : i32
    %c0_i32_1 = arith.constant 0 : i32
    return %c0_i32, %c0_i32_0 : i32, i32
  }
  func.func @transform_3(%arg0: i32) -> (i32, i32) {
    %c0_i32 = arith.constant 0 : i32
    %c0_i32_0 = arith.constant 0 : i32
    %c0_i32_1 = arith.constant 0 : i32
    return %c0_i32, %c0_i32_0 : i32, i32
  }
  func.func @transform_4(%arg0: i32) -> (i32, i32) {
    %c0_i32 = arith.constant 0 : i32
    %c0_i32_0 = arith.constant 0 : i32
    %c0_i32_1 = arith.constant 0 : i32
    return %c0_i32, %c0_i32_0 : i32, i32
  }
  func.func @transform_5(%arg0: i32) -> (i32, i32) {
    %c0_i32 = arith.constant 0 : i32
    %c0_i32_0 = arith.constant 0 : i32
    %c0_i32_1 = arith.constant 0 : i32
    return %c0_i32, %c0_i32_0 : i32, i32
  }
  func.func @transform_6(%arg0: i32) -> (i32, i32, i32) {
    %c0_i32 = arith.constant 0 : i32
    %c0_i32_0 = arith.constant 0 : i32
    %c0_i32_1 = arith.constant 0 : i32
    return %arg0, %c0_i32, %c0_i32_0 : i32, i32, i32
  }
}

</mosaic_0001>

<bundles_post_ra>
// kernel: tpu_custom_call.1
= control target key start
LH: loop header
LB: loop body
LE: loop exit
PB: predicated region body
PF: predicated region fallthrough
CT: control target
= control target key end

     0   :  { %s2922_s0 = inlined_call_operand.hbm [shape: f32[2,8,64], index: 0, kind: input, shape index: {}]   ;;  %s2923_s1 = inlined_call_operand.hbm [shape: f32[2,8,64], index: 1, kind: input, shape index: {}]   ;;  %s2924_s2 = inlined_call_operand.hbm [shape: bf16[64,64], index: 2, kind: input, shape index: {}]   ;;  %s2925_s3 = inlined_call_operand.hbm [shape: bf16[64,128], index: 3, kind: input, shape index: {}]   ;;  %s2926_s4 = inlined_call_operand.hbm [shape: bf16[64,64], index: 4, kind: input, shape index: {}]   ;;  %s2927_s5 = inlined_call_operand.vmem [shape: f32[1,64], index: 5, kind: input, shape index: {}]   ;;  %s2928_s6 = inlined_call_operand.hbm [shape: f32[2,8,64], index: 6, kind: output, shape index: {}]  }
   0x1   :  { %2933 = sst [smem:[#allocation20_spill]] %s2924_s2 }
   0x2   :  { %2934 = sst [smem:[#allocation21_spill]] %s2925_s3 }
   0x3   :  { %2935 = sst [smem:[#allocation22_spill]] %s2926_s4 }
   0x4   :  { %11 = vsyncpa [#allocation6], 0 }
   0x5   :  { %13 = vsyncpa [#allocation6 + $0x1], 0 }
   0x6   :  { %14 = vsyncpa [#allocation9], 0 }
   0x7   :  { %16 = vsyncpa [#allocation9 + $0x1], 0 }
   0x8   :  { %17 = vsyncpa [#allocation12], 0 }
   0x9   :  { %18 = vsyncpa [#allocation7], 0 }
   0xa   :  { %20 = vsyncpa [#allocation7 + $0x1], 0  ;;  %s2401_s21 = smov 0   ;;  %s2403_s22 = smov 0  }
   0xb   :  { %s2405_s23 = smov 0   ;;  %s2407_s24 = smov 0  }
   0xc LB: > { %s2422_s25 = sadd.s32 4294967295, %s2339_s24   ;;  %s1710_s26 = sadd.s32 4294967294, %s2339_s24   ;;  %s2339_s24 = sphi %s2407_s24, %s2959_s24   ;;  %s2335_s23 = sphi %s2405_s23, %s2958_s23   ;;  %s2331_s22 = sphi %s2403_s22, %s2957_s22   ;;  %s2327_s21 = sphi %s2401_s21, %s2956_s21  }
   0xd   : > { %p46_p0 = scmp.ne.s32.totalorder %s2331_s22, %s2327_s21  ;;  %p2929_p1 = scmp.eq.s32.totalorder %s2422_s25, 0 }
   0xe   : > { %p186_p3 = scmp.eq.s32.totalorder %s1710_s26, 1  ;;  %p1711_p5 = scmp.ge.s32.totalorder %s2339_s24, 1 }
   0xf   : > { %p2431_p4 = por %p2929_p1, %p46_p0  ;;  %p193_p7 = scmp.lt.s32.totalorder %s2339_s24, 3 }
  0x10   : > { %p2436_p6 = por %p186_p3, %p46_p0  ;;  %s2341_s30 = smov [#allocation10]  }
  0x11   : > { %s2936_s27 = scalar_select %p2431_p4, 1, 0 }
  0x12   : > { %s2937_s28 = scalar_select %p2436_p6, 1, 0 }
  0x13   : > { %p2441_p8 = pnand %p1711_p5, %p193_p7  ;;  %s205_s7 = sshll.u32 %s2341_s30, 4  ;;  %s2445_s7 = int_to_ptr.vmem [resolvable:$true] %s205_s7 }
  0x14   : > { %s2342_s9 = smov [#allocation11]   ;;  %s2343_s11 = smov [#allocation13]  }
  0x15   : > { %s2938_s29 = scalar_select %p2441_p8, 1, 0 }
  0x16   : > { %p1975_p9 = pneg %p2441_p8  ;;  %s218_s10 = sshll.u32 %s2342_s9, 4  ;;  %s2456_s10 = int_to_ptr.vmem [resolvable:$true] %s218_s10 }
  0x17   : > { %s2458_s12 = sshll.u32 %s2343_s11, 4  ;;  %s2940_s2 = sld [smem:[#allocation20_spill]]  ;;  %s232_s12 = int_to_ptr.vmem [resolvable:$true] %s2458_s12 }
  0x18   : > { %p2452_p11 = pnand %p1975_p9, %p2929_p1 }
  0x1a   : > { %p2468_p13 = pneg %p2452_p11 }
  0x1d   : > { %s2117_s15 = scalar_lea.hbm %s2940_s2, 512 }
  0x1e   : > { %p2118_p12 = scmp.ne.s32.totalorder %s2940_s2, %s2117_s15  ;;  %p2124_p5 = scmp.lt.u32.totalorder %s2117_s15, %s2940_s2 }
  0x20   : > { %p2120_p0 = pnand %p2468_p13, %p2118_p12 }
  0x22   : > { %p2121_p3 = pneg %p2120_p0 }
  0x24   : > { %p2126_p7 = pnand %p2124_p5, %p2121_p3 }
  0x26   : > { %2129 = shalt.err (!%p2126_p7)
}
  0x27   : > { %s2130_s26 = scalar_lea.vmem %s2445_s7, 512  ;;  %p2138_p2 = scmp.lt.s32.totalorder %s2445_s7, %s2445_s7 }
  0x28   : > { %p2131_p9 = scmp.ne.s32.totalorder %s2445_s7, %s2130_s26  ;;  %p2139_p6 = scmp.lt.s32.totalorder %s2130_s26, %s2130_s26 }
  0x2a   : > { %p2133_p10 = pnand %p2131_p9, %p2468_p13  ;;  %p2140_p12 = por %p2139_p6, %p2138_p2 }
  0x2c   : > { %p2134_p1 = pneg %p2133_p10 }
  0x2e   : > { %p2141_p0 = pnand %p2140_p12, %p2134_p1 }
  0x30   : > { %2144 = shalt.err (!%p2141_p0)
}
  0x31   : > { %s2344_s30 = smov 64   ;;  %s2345_s9 = smov 4  }
  0x32   : > { %1978 = dma.hbm_to_vmem [thread:$0]  (!%p2452_p11), %s2940_s2, 512, %s2445_s7, [#allocation9], %s2344_s30, %s2344_s30, %s2345_s9  }
  0x33   : > { %s2942_s3 = sld [smem:[#allocation21_spill]] }
  0x39   : > { %s2145_s16 = scalar_lea.hbm %s2942_s3, 512 }
  0x3a   : > { %p2146_p1 = scmp.ne.s32.totalorder %s2942_s3, %s2145_s16  ;;  %p2152_p10 = scmp.lt.u32.totalorder %s2145_s16, %s2942_s3 }
  0x3c   : > { %p2148_p2 = pnand %p2146_p1, %p2468_p13 }
  0x3e   : > { %p2149_p6 = pneg %p2148_p2 }
  0x40   : > { %p2154_p3 = pnand %p2152_p10, %p2149_p6 }
  0x42   : > { %2157 = shalt.err (!%p2154_p3)
}
  0x43   : > { %s2158_s7 = scalar_lea.vmem %s2456_s10, 512  ;;  %p2166_p12 = scmp.lt.s32.totalorder %s2456_s10, %s2456_s10 }
  0x44   : > { %p2159_p5 = scmp.ne.s32.totalorder %s2456_s10, %s2158_s7  ;;  %p2167_p0 = scmp.lt.s32.totalorder %s2158_s7, %s2158_s7 }
  0x46   : > { %p2161_p7 = pnand %p2159_p5, %p2468_p13  ;;  %p2168_p1 = por %p2167_p0, %p2166_p12 }
  0x48   : > { %p2162_p9 = pneg %p2161_p7 }
  0x4a   : > { %p2169_p2 = pnand %p2168_p1, %p2162_p9 }
  0x4c   : > { %2172 = shalt.err (!%p2169_p2)
}
  0x4d   : > { %1981 = dma.hbm_to_vmem [thread:$0]  (!%p2452_p11), %s2942_s3, 512, %s2456_s10, [#allocation12], %s2344_s30, %s2344_s30, %s2345_s9  }
  0x4e   : > { %s2943_s4 = sld [smem:[#allocation22_spill]] }
  0x54   : > { %s2173_s16 = scalar_lea.hbm %s2943_s4, 512 }
  0x55   : > { %p2174_p6 = scmp.ne.s32.totalorder %s2943_s4, %s2173_s16  ;;  %p2180_p5 = scmp.lt.u32.totalorder %s2173_s16, %s2943_s4 }
  0x57   : > { %p2176_p10 = pnand %p2174_p6, %p2468_p13 }
  0x59   : > { %p2177_p3 = pneg %p2176_p10 }
  0x5b   : > { %p2182_p7 = pnand %p2180_p5, %p2177_p3 }
  0x5d   : > { %2185 = shalt.err (!%p2182_p7)
}
  0x5e   : > { %s2186_s7 = scalar_lea.vmem %s232_s12, 512  ;;  %p2194_p1 = scmp.lt.s32.totalorder %s232_s12, %s232_s12 }
  0x5f   : > { %p2187_p9 = scmp.ne.s32.totalorder %s232_s12, %s2186_s7  ;;  %p2195_p2 = scmp.lt.s32.totalorder %s2186_s7, %s2186_s7 }
  0x61   : > { %p2189_p12 = pnand %p2187_p9, %p2468_p13  ;;  %p2196_p4 = por %p2195_p2, %p2194_p1 }
  0x63   : > { %p2190_p0 = pneg %p2189_p12 }
  0x65   : > { %p2197_p8 = pnand %p2196_p4, %p2190_p0 }
  0x67   : > { %2200 = shalt.err (!%p2197_p8)
}
  0x68   : > { %1984 = dma.hbm_to_vmem [thread:$0]  (!%p2452_p11), %s2943_s4, 512, %s232_s12, [#allocation12], %s2344_s30, %s2344_s30, %s2345_s9  }
  0x69   : > { %s2541_s18 = sadd.s32 1, %s2339_s24   ;;  %s33_s13 = sadd.s32 1, %s2335_s23 }
  0x6a   : > { %s30_s8 = ssub.s32 %s2339_s24, %s2541_s18  ;;  %p40_p8 = scmp.ne.s32.totalorder %s2335_s23, %s2331_s22 }
  0x6b   : > { %p31_p4 = scmp.eq.s32.totalorder %s30_s8, 0  ;;  %p41_p13 = scmp.eq.s32.totalorder %s2339_s24, 0 }
  0x6c   : > { %p1999_p6 = scmp.lt.s32.totalorder %s2339_s24, 2  ;;  %p2944_p3 = scmp.eq.s32.totalorder %s2422_s25, 1 }
  0x6d   : > { %s2551_s14 = scalar_select %p31_p4, %s2335_s23, %s33_s13  }
  0x6e   : > { %p42_p10 = por %p41_p13, %p40_p8  ;;  %p2555_p5 = por %p2944_p3, %p40_p8 }
  0x6f   : > { %s248_s16 = sand.u32 1, %s2335_s23   ;;  %s1717_s17 = sshll.u32 %s2339_s24, 7 }
  0x70   : > { %s2945_s15 = scalar_select %p2555_p5, 1, 0 }
  0x71   : > { %s2561_s12 = sshll.u32 %s248_s16, 3  ;;  %s2566_s19 = scalar_lea.hbm %s2922_s0, %s1717_s17 }
  0x72   : > { %s252_s20 = scalar_lea.vmem [#allocation5], %s2561_s12  ;;  %p2569_p11 = pnand %p1999_p6, %p42_p10 }
  0x73   : > { %s259_s26 = sshll.u32 %s252_s20, 4  ;;  %s2578_s8 = scalar_lea.hbm %s2923_s1, %s1717_s17  ;;  %s2573_s26 = int_to_ptr.vmem [resolvable:$true] %s259_s26 }
  0x74   : > { %s249_s13 = scalar_lea.sflag [#allocation6], %s248_s16  ;;  %s2201_s30 = scalar_lea.hbm %s2566_s19, 128 }
  0x75   : > { %p2202_p7 = scmp.ne.s32.totalorder %s2566_s19, %s2201_s30  ;;  %p2203_p9 = pneg %p2569_p11 }
  0x76   : > { %s2206_s2 = scalar_lea.hbm %s2922_s0, 256  ;;  %p2207_p1 = scmp.lt.u32.totalorder %s2566_s19, %s2922_s0 }
  0x77   : > { %p2204_p12 = pnand %p2203_p9, %p2202_p7  ;;  %p2208_p2 = scmp.lt.u32.totalorder %s2206_s2, %s2201_s30 }
  0x78   : > { %p2210_p8 = scmp.lt.u32.totalorder %s2201_s30, %s2566_s19 }
  0x79   : > { %p2205_p0 = pneg %p2204_p12  ;;  %p2209_p4 = por %p2208_p2, %p2207_p1 }
  0x7b   : > { %p2211_p13 = por %p2210_p8, %p2209_p4 }
  0x7d   : > { %p2212_p6 = pnand %p2211_p13, %p2205_p0 }
  0x7f   : > { %2215 = shalt.err (!%p2212_p6)
}
  0x80   : > { %s2216_s16 = scalar_lea.vmem %s2573_s26, 128  ;;  %s2346_s17 = smov [#allocation5]  }
  0x81   : > { %p2217_p10 = scmp.ne.s32.totalorder %s2573_s26, %s2216_s16  ;;  %s2221_s10 = sshll.u32 %s2346_s17, 4  ;;  %s2222_s10 = int_to_ptr.vmem [resolvable:$false] %s2221_s10 }
  0x82   : > { %s2223_s3 = scalar_lea.vmem %s2222_s10, 256  ;;  %p2224_p12 = scmp.lt.s32.totalorder %s2573_s26, %s2222_s10 }
  0x83   : > { %p2219_p3 = pnand %p2217_p10, %p2203_p9  ;;  %p2225_p1 = scmp.lt.s32.totalorder %s2223_s3, %s2216_s16 }
  0x85   : > { %p2220_p7 = pneg %p2219_p3  ;;  %p2226_p2 = por %p2225_p1, %p2224_p12 }
  0x87   : > { %p2227_p4 = pnand %p2226_p2, %p2220_p7 }
  0x89   : > { %2230 = shalt.err (!%p2227_p4)
}
  0x8a   : > { %1988 = dma.hbm_to_vmem [thread:$0]  (!%p2569_p11), %s2566_s19, 128, %s2573_s26, %s249_s13  }
  0x8b   : > { %s266_s2 = sand.u32 1, %s2339_s24   ;;  %s270_s4 = scalar_lea.vmem [#allocation8], %s2561_s12 }
  0x8c   : > { %s277_s11 = sshll.u32 %s270_s4, 4  ;;  %s267_s30 = scalar_lea.sflag [#allocation9], %s266_s2  ;;  %s278_s11 = int_to_ptr.vmem [resolvable:$true] %s277_s11 }
  0x8d   : > { %s2231_s9 = scalar_lea.hbm %s2578_s8, 128  ;;  %s2236_s17 = scalar_lea.hbm %s2923_s1, 256 }
  0x8e   : > { %p2232_p0 = scmp.ne.s32.totalorder %s2578_s8, %s2231_s9  ;;  %p2237_p6 = scmp.lt.u32.totalorder %s2578_s8, %s2923_s1 }
  0x8f   : > { %p2238_p10 = scmp.lt.u32.totalorder %s2236_s17, %s2231_s9  ;;  %p2240_p7 = scmp.lt.u32.totalorder %s2231_s9, %s2578_s8 }
  0x90   : > { %p2234_p8 = pnand %p2232_p0, %p2203_p9 }
  0x91   : > { %p2239_p3 = por %p2238_p10, %p2237_p6 }
  0x92   : > { %p2235_p13 = pneg %p2234_p8 }
  0x93   : > { %p2241_p12 = por %p2240_p7, %p2239_p3 }
  0x95   : > { %p2242_p1 = pnand %p2241_p12, %p2235_p13 }
  0x97   : > { %2245 = shalt.err (!%p2242_p1)
}
  0x98   : > { %s2246_s12 = scalar_lea.vmem %s278_s11, 128  ;;  %s2347_s19 = smov [#allocation8]  }
  0x99   : > { %p2247_p2 = scmp.ne.s32.totalorder %s278_s11, %s2246_s12  ;;  %s2251_s26 = sshll.u32 %s2347_s19, 4  ;;  %s2252_s26 = int_to_ptr.vmem [resolvable:$false] %s2251_s26 }
  0x9a   : > { %s2253_s13 = scalar_lea.vmem %s2252_s26, 256  ;;  %p2254_p8 = scmp.lt.s32.totalorder %s278_s11, %s2252_s26 }
  0x9b   : > { %p2249_p4 = pnand %p2247_p2, %p2203_p9  ;;  %p2255_p5 = scmp.lt.s32.totalorder %s2253_s13, %s2246_s12 }
  0x9d   : > { %p2250_p0 = pneg %p2249_p4  ;;  %p2256_p6 = por %p2255_p5, %p2254_p8 }
  0x9f   : > { %p2257_p10 = pnand %p2256_p6, %p2250_p0 }
  0xa1   : > { %2260 = shalt.err (!%p2257_p10)
}
  0xa2   : > { %1991 = dma.hbm_to_vmem [thread:$0]  (!%p2569_p11), %s2578_s8, 128, %s278_s11, %s267_s30  }
  0xa3   : > { %p2947_p13 = scmp.ne.s32.totalorder %s2938_s29, 0 }
  0xa4   : > { %s2629_s2 = sand.u32 (!%p2947_p13), 1, %s2331_s22   ;;  %p2948_p5 = scmp.ne.s32.totalorder (!%p2947_p13), %s2936_s27, 0 }
  0xa5   : > { %286 = sbr.rel (%p2947_p13) target bundleno = 1743 (0x6cf), region = 44  ;;  %s2632_s4 = sshll.u32 (!%p2947_p13), %s2629_s2, 3 }
  0xa6   : > { %s289_s9 = scalar_lea.sflag (!%p2947_p13), [#allocation6], %s2629_s2  ;;  %s292_s20 = scalar_lea.vmem (!%p2947_p13), [#allocation5], %s2632_s4 }
  0xac   : > { %2306 = dma.done.wait (%p2948_p5), %s289_s9, 128  }
  0xad   : > { %2308 = vsyncadd (%p2948_p5), %s289_s9, 4294967168  ;;  %s297_s29 = sand.u32 1, %s2422_s25   ;;  %s301_s8 = scalar_lea.vmem [#allocation8], %s2632_s4 }
  0xae   : > { %s298_s7 = scalar_lea.sflag [#allocation9], %s297_s29 }
  0xaf   : > { %2310 = dma.done.wait (%p2948_p5), %s298_s7, 128  }
  0xb0   : > { %2312 = vsyncadd (%p2948_p5), %s298_s7, 4294967168  ;;  %p2949_p11 = scmp.eq.s32.totalorder %s2422_s25, 0 }
  0xb2   : > { %2314 = dma.done.wait (%p2949_p11), [#allocation9], 512   ;;  %p2950_p9 = pmov %p2949_p11 }
  0xb4   : > { %2316 = vsyncadd (%p2950_p9), [#allocation9], 4294966784  ;;  %p2951_p3 = pmov %p2950_p9 }
  0xb6   : > { %2318 = dma.done.wait (%p2951_p3), [#allocation12], 1024   ;;  %p2952_p7 = pmov %p2951_p3 }
  0xb7   : > { %v2348_v0 = vmov 0.0   ;;  %vm2349_vm0 = vmmov 0   ;;  %v2058_v1 = vld [vmem:[#allocation11] sm:$0xff]   ;;  %v2060_v3 = vld [vmem:[#allocation11 + $0x8] sm:$0xff]   ;;  %v2062_v5 = vld [vmem:[#allocation11 + $0x10] sm:$0xff]   ;;  %vm384_vm1 = vcmask 523264  }
  0xb8   : > { %2320 = vsyncadd (%p2952_p7), [#allocation12], 4294966272  ;;  %1837 = vmatprep.subr.bf16.mxu1 %v2348_v0  ;;  %1825 = vmatprep.subr.bf16.mxu0 %v2348_v0  ;;  %v2059_v2 = vld [vmem:[#allocation10] sm:$0xff]   ;;  %v2061_v4 = vld [vmem:[#allocation10 + $0x8] sm:$0xff]   ;;  %vm429_vm2 = vcmask 519168   ;;  %vm510_vm3 = vcmask 64512  }
  0xb9   : > { %1845 = vmatprep.mubr.msk.bf16.mxu1 %vm2349_vm0, %v2348_v0  ;;  %1833 = vmatprep.mubr.msk.bf16.mxu0 %vm2349_vm0, %v2348_v0  ;;  %v2063_v6 = vld [vmem:[#allocation10 + $0x10] sm:$0xff]   ;;  %v2064_v7 = vld [vmem:[#allocation11 + $0x18] sm:$0xff]   ;;  %v348_v10 = vld [vmem:[%s292_s20] sm:$0xff]  ;;  %s2350_s27 = smov 112   ;;  %s2351_s11 = smov 120   ;;  %vm577_vm4 = vcmask 1043456  }
  0xba   : > { %1838 = vmatpush3.bf16.msra.mxu1 %v2058_v1  ;;  %1826 = vmatpush3.bf16.msra.mxu0 %v2059_v2  ;;  %v350_v8 = vld [vmem:[%s301_s8] sm:$0xff]  ;;  %v349_v12 = vpack.c.bf16 %v348_v10, %v348_v10  ;;  %s2352_s30 = smov 104   ;;  %s2353_s16 = smov 96   ;;  %vm744_vm5 = vcmask 130112   ;;  %vm868_vm6 = vcmask 195712   ;;  %vm992_vm7 = vcmask 261312  }
  0xbb   : > { %1839 = vmatprep.subr.bf16.mxu1 %v2348_v0  ;;  %1827 = vmatprep.subr.bf16.mxu0 %v2348_v0  ;;  %v2065_v9 = vld [vmem:[#allocation10 + $0x18] sm:$0xff]   ;;  %v351_v11 = vpack.c.bf16 %v350_v8, %v350_v8  ;;  %s2354_s17 = smov 88   ;;  %s2355_s10 = smov 80   ;;  %vm1116_vm8 = vcmask 326912   ;;  %vm1240_vm9 = vcmask 392512   ;;  %vm1364_vm10 = vcmask 458112  }
  0xbc   : > { %s2356_s3 = smov 72   ;;  %s2357_s12 = smov 56   ;;  %vm1488_vm11 = vcmask 523712  }
  0xbd   : > { %s2358_s19 = smov 64   ;;  %s2359_s26 = smov 48  }
  0xbe   : > { %1840 = vmatpush3.bf16.msra.mxu1 %v2060_v3  ;;  %1828 = vmatpush3.bf16.msra.mxu0 %v2061_v4  ;;  %s2360_s13 = smov 40   ;;  %s2361_s9 = smov 24  }
  0xbf   : > { %1841 = vmatprep.subr.bf16.mxu1 %v2348_v0  ;;  %1829 = vmatprep.subr.bf16.mxu0 %v2348_v0  ;;  %s2362_s20 = smov 16   ;;  %s2363_s29 = smov 8  }
  0xc0   : > { %s2364_s7 = smov 32   ;;  %p2953_p1 = scmp.ne.s32.totalorder %s2945_s15, 0 }
  0xc2   : > { %1842 = vmatpush3.bf16.msra.mxu1 %v2062_v5  ;;  %1830 = vmatpush3.bf16.msra.mxu0 %v2063_v6 }
  0xc3   : > { %1843 = vmatprep.subr.bf16.mxu1 %v2348_v0  ;;  %1831 = vmatprep.subr.bf16.mxu0 %v2348_v0 }
  0xc6   : > { %1844 = vmatpush3.bf16.msra.mxu1 %v2064_v7  ;;  %1832 = vmatpush3.bf16.msra.mxu0 %v2065_v9 }
  0xc7   : > { %1849 = vmatprep.subr.bf16.mxu1 %v2348_v0  ;;  %1861 = vmatprep.subr.bf16.mxu0 %v2348_v0 }
  0xc9   : > { %1846 = vmatmul.mubr.msk.bf16.vlgmr.msra.gmra.mrb[0].mxu1 %vm384_vm1, %v351_v11  ;;  %1834 = vmatmul.mubr.msk.bf16.vlgmr.msra.gmra.mrb[0].mxu0 %vm384_vm1, %v349_v12 }
  0xca   : > { %1851 = vmatprep.mubr.msk.bf16.mxu1 %vm2349_vm0, %v2348_v0  ;;  %1863 = vmatprep.mubr.msk.bf16.mxu0 %vm2349_vm0, %v2348_v0 }
 0x19c   : > { %v500_v13 = vpop.f32.mrb[0].mxu1  ;;  %v422_v16 = vpop.f32.mrb[0].mxu0 }
 0x19d   : > { %v506_v14 = vpack.c.bf16 %v500_v13, %v500_v13  ;;  %v1847_v15 = vpop.f32.mrb[1].mxu1  ;;  %v428_v18 = vpack.c.bf16 %v422_v16, %v422_v16  ;;  %v1835_v19 = vpop.f32.mrb[1].mxu0 }
 0x19e   : > { %v503_v17 = vpop.f32.mrb[2].mxu1  ;;  %v425_v21 = vpop.f32.mrb[2].mxu0 }
 0x19f   : > { %507 = vst [vmem:[#allocation3] sm:$0xf] %v506_v14  ;;  %v1848_v20 = vpop.f32.mrb[3].mxu1  ;;  %430 = vst.msk [vmem:[#allocation2] sm:$0xf] %vm429_vm2, %v428_v18  ;;  %v1836_v22 = vpop.f32.mrb[3].mxu0 }
 0x1a6   : > { %v2676_v23 = vld [vmem:[#allocation3] sm:$0xf]  ;;  %v2068_v27 = vld [vmem:[#allocation2] ss:$0 sps:$4 sm:$0xff]  }
 0x1a7   : > { %v2678_v24 = vld [vmem:[#allocation3] ss:$0 sps:$4 sm:$0xff]   ;;  %v515_v25 = vsel %vm510_vm3, %v2676_v23, 0  ;;  %v2069_v28 = vld [vmem:[#allocation2] ss:$0 sps:$4 sm:$0xff]  }
 0x1a8   : > { %v2682_v26 = vld [vmem:[#allocation3] ss:$0 sps:$4 sm:$0xff]   ;;  %1850 = vmatpush3.bf16.xpose.msra.mxu1 %v515_v25  ;;  %756 = vrot.lane.b32.xlu1 %v2678_v24, %s2350_s27  ;;  %v508_v29 = vld [vmem:[#allocation2] sm:$0xf] }
 0x1a9   : > { %632 = vrot.lane.b32.xlu0 %v2682_v26, %s2351_s11  ;;  %1855 = vmatprep.subr.bf16.mxu1 %v2348_v0  ;;  %v2070_v30 = vld [vmem:[#allocation2] ss:$0 sps:$4 sm:$0xff]   ;;  %v2688_v31 = vld [vmem:[#allocation3] ss:$0 sps:$4 sm:$0xff]  }
 0x1aa   : > { %v2072_v32 = vld [vmem:[#allocation2] ss:$0 sps:$4 sm:$0xff]   ;;  %v2693_v33 = vld [vmem:[#allocation3] ss:$0 sps:$4 sm:$0xff]  }
 0x1ab   : > { %v2074_v34 = vld [vmem:[#allocation2] ss:$0 sps:$4 sm:$0xff]   ;;  %v2696_v35 = vld [vmem:[#allocation3] ss:$0 sps:$4 sm:$0xff]  }
 0x1ac   : > { %751 = vrot.lane.b32.xlu1 %v2068_v27, %s2350_s27  ;;  %v2076_v36 = vld [vmem:[#allocation2] ss:$0 sps:$4 sm:$0xff]   ;;  %v2699_v37 = vld [vmem:[#allocation3] ss:$0 sps:$4 sm:$0xff]  }
 0x1ad   : > { %627 = vrot.lane.b32.xlu0 %v2069_v28, %s2351_s11  ;;  %v2078_v38 = vld [vmem:[#allocation2] ss:$0 sps:$4 sm:$0xff]   ;;  %v2702_v39 = vld [vmem:[#allocation3] ss:$0 sps:$4 sm:$0xff]   ;;  %s1775_s11 = sshll.u32 %s2422_s25, 7  ;;  %s1576_s25 = scalar_lea.sflag [#allocation7], %s2629_s2 }
 0x1af   : > { %1852 = vmatmul.mubr.msk.bf16.vlgmr.msra.gmra.mrb[4].mxu1 %vm510_vm3, %v508_v29 }
 0x1b0   : > { %875 = vrot.lane.b32.xlu1 %v2070_v30, %s2352_s30  ;;  %1857 = vmatprep.mubr.msk.bf16.mxu1 %vm2349_vm0, %v2348_v0 }
 0x1b1   : > { %880 = vrot.lane.b32.xlu0 %v2688_v31, %s2352_s30  ;;  %s346_s30 = scalar_lea.vmem [#allocation14], %s2632_s4 }
 0x1b4   : > { %999 = vrot.lane.b32.xlu1 %v2072_v32, %s2353_s16 }
 0x1b5   : > { %1004 = vrot.lane.b32.xlu0 %v2693_v33, %s2353_s16  ;;  %s1589_s16 = sshll.u32 %s346_s30, 4  ;;  %s2879_s16 = int_to_ptr.vmem [resolvable:$true] %s1589_s16 }
 0x1b6   : > { %s2261_s4 = scalar_lea.vmem %s2879_s16, 128 }
 0x1b7   : > { %p2262_p12 = scmp.ne.s32.totalorder %s2879_s16, %s2261_s4 }
 0x1b8   : > { %1123 = vrot.lane.b32.xlu1 %v2074_v34, %s2354_s17 }
 0x1b9   : > { %1128 = vrot.lane.b32.xlu0 %v2696_v35, %s2354_s17  ;;  %p2263_p2 = pnand %p2262_p12, %p2953_p1 }
 0x1bb   : > { %p2264_p4 = pneg %p2263_p2 }
 0x1bc   : > { %1247 = vrot.lane.b32.xlu1 %v2076_v36, %s2355_s10 }
 0x1bd   : > { %1252 = vrot.lane.b32.xlu0 %v2699_v37, %s2355_s10 }
 0x1c0   : > { %1371 = vrot.lane.b32.xlu1 %v2078_v38, %s2356_s3 }
 0x1c1   : > { %1376 = vrot.lane.b32.xlu0 %v2702_v39, %s2356_s3  ;;  %s2877_s3 = scalar_lea.hbm %s2928_s6, %s1775_s11 }
 0x21a   : > { %v757_v42 = vpop.permute.xlu1 %756 }
 0x21b   : > { %v633_v40 = vpop.permute.xlu0 %632  ;;  %v762_v44 = vsel %vm510_vm3, %v757_v42, 0 }
 0x21c   : > { %v638_v41 = vsel %vm510_vm3, %v633_v40, 0 }
 0x21d   : > { %1862 = vmatpush3.bf16.xpose.msra.mxu0 %v638_v41 }
 0x21e   : > { %1873 = vmatprep.subr.bf16.mxu0 %v2348_v0  ;;  %v752_v46 = vpop.permute.xlu1 %751 }
 0x21f   : > { %v628_v43 = vpop.permute.xlu0 %627 }
 0x222   : > { %v876_v49 = vpop.permute.xlu1 %875 }
 0x223   : > { %v881_v45 = vpop.permute.xlu0 %880 }
 0x224   : > { %1864 = vmatmul.mubr.msk.bf16.vlgmr.msra.gmra.mrb[4].mxu0 %vm510_vm3, %v628_v43  ;;  %v886_v47 = vsel %vm510_vm3, %v881_v45, 0  ;;  %v1738_v45 = vcombine.low %v2676_v23, %v2676_v23 }
 0x225   : > { %1874 = vmatpush3.bf16.xpose.msra.mxu0 %v762_v44  ;;  %1875 = vmatprep.mubr.msk.bf16.mxu0 %vm2349_vm0, %v2348_v0 }
 0x226   : > { %1885 = vmatprep.subr.bf16.mxu0 %v2348_v0  ;;  %v1000_v52 = vpop.permute.xlu1 %999 }
 0x227   : > { %v1005_v48 = vpop.permute.xlu0 %1004 }
 0x228   : > { %v1010_v50 = vsel %vm510_vm3, %v1005_v48, 0 }
 0x22a   : > { %v1124_v55 = vpop.permute.xlu1 %1123 }
 0x22b   : > { %v1129_v51 = vpop.permute.xlu0 %1128 }
 0x22c   : > { %1876 = vmatmul.mubr.msk.bf16.vlgmr.msra.gmra.mrb[8].mxu0 %vm510_vm3, %v752_v46  ;;  %v1134_v53 = vsel %vm510_vm3, %v1129_v51, 0 }
 0x22d   : > { %1886 = vmatpush3.bf16.xpose.msra.mxu0 %v886_v47  ;;  %1887 = vmatprep.mubr.msk.bf16.mxu0 %vm2349_vm0, %v2348_v0 }
 0x22e   : > { %1897 = vmatprep.subr.bf16.mxu0 %v2348_v0  ;;  %v1248_v58 = vpop.permute.xlu1 %1247 }
 0x22f   : > { %v1253_v54 = vpop.permute.xlu0 %1252 }
 0x230   : > { %v1258_v56 = vsel %vm510_vm3, %v1253_v54, 0 }
 0x232   : > { %v1372_v60 = vpop.permute.xlu1 %1371 }
 0x233   : > { %v1377_v57 = vpop.permute.xlu0 %1376 }
 0x234   : > { %1888 = vmatmul.mubr.msk.bf16.vlgmr.msra.gmra.mrb[12].mxu0 %vm510_vm3, %v876_v49  ;;  %v1382_v59 = vsel %vm510_vm3, %v1377_v57, 0 }
 0x235   : > { %1898 = vmatpush3.bf16.xpose.msra.mxu0 %v1010_v50  ;;  %1899 = vmatprep.mubr.msk.bf16.mxu0 %vm2349_vm0, %v2348_v0 }
 0x236   : > { %1909 = vmatprep.subr.bf16.mxu0 %v2348_v0 }
 0x23c   : > { %1900 = vmatmul.mubr.msk.bf16.vlgmr.msra.gmra.mrb[16].mxu0 %vm510_vm3, %v1000_v52 }
 0x23d   : > { %1910 = vmatpush3.bf16.xpose.msra.mxu0 %v1134_v53  ;;  %1911 = vmatprep.mubr.msk.bf16.mxu0 %vm2349_vm0, %v2348_v0 }
 0x23e   : > { %1921 = vmatprep.subr.bf16.mxu0 %v2348_v0 }
 0x244   : > { %1912 = vmatmul.mubr.msk.bf16.vlgmr.msra.gmra.mrb[20].mxu0 %vm510_vm3, %v1124_v55 }
 0x245   : > { %1922 = vmatpush3.bf16.xpose.msra.mxu0 %v1258_v56  ;;  %1923 = vmatprep.mubr.msk.bf16.mxu0 %vm2349_vm0, %v2348_v0 }
 0x246   : > { %1933 = vmatprep.subr.bf16.mxu0 %v2348_v0 }
 0x24c   : > { %1924 = vmatmul.mubr.msk.bf16.vlgmr.msra.gmra.mrb[24].mxu0 %vm510_vm3, %v1248_v58 }
 0x24d   : > { %1934 = vmatpush3.bf16.xpose.msra.mxu0 %v1382_v59  ;;  %1935 = vmatprep.mubr.msk.bf16.mxu0 %vm2349_vm0, %v2348_v0 }
 0x24e   : > { %1945 = vmatprep.subr.bf16.mxu0 %v2348_v0 }
 0x254   : > { %1936 = vmatmul.mubr.msk.bf16.vlgmr.msra.gmra.mrb[28].mxu0 %vm510_vm3, %v1372_v60 }
 0x255   : > { %1953 = vmatprep.mubr.msk.bf16.mxu0 %vm2349_vm0, %v2348_v0 }
 0x282   : > { %v551_v61 = vpop.f32.mrb[4].mxu1 }
 0x283   : > { %v1853_v62 = vpop.f32.mrb[5].mxu1  ;;  %v557_v63 = vsel %vm510_vm3, %v551_v61, -inf }
 0x284   : > { %558 = vmax.xlane.f32.xlu0 %v557_v63  ;;  %v554_v1 = vpop.f32.mrb[6].mxu1 }
 0x285   : > { %v1854_v2 = vpop.f32.mrb[7].mxu1 }
 0x2f7   : > { %v674_v3 = vpop.f32.mrb[4].mxu0 }
 0x2f8   : > { %v1865_v4 = vpop.f32.mrb[5].mxu0  ;;  %v680_v5 = vsel %vm510_vm3, %v674_v3, -inf }
 0x2f9   : > { %681 = vmax.xlane.f32.xlu1 %v680_v5  ;;  %v677_v6 = vpop.f32.mrb[6].mxu0 }
 0x2fa   : > { %v1866_v7 = vpop.f32.mrb[7].mxu0 }
 0x2ff   : > { %v798_v8 = vpop.f32.mrb[8].mxu0 }
 0x300   : > { %v1877_v9 = vpop.f32.mrb[9].mxu0  ;;  %v804_v10 = vsel %vm510_vm3, %v798_v8, -inf }
 0x301   : > { %805 = vmax.xlane.f32.xlu0 %v804_v10  ;;  %v801_v11 = vpop.f32.mrb[10].mxu0 }
 0x302   : > { %v1878_v12 = vpop.f32.mrb[11].mxu0 }
 0x307   : > { %v2743_v13 = vpop.f32.mrb[12].mxu0 }
 0x308   : > { %v1889_v14 = vpop.f32.mrb[13].mxu0  ;;  %v928_v15 = vsel %vm510_vm3, %v2743_v13, -inf }
 0x309   : > { %929 = vmax.xlane.f32.xlu0 %v928_v15  ;;  %v925_v16 = vpop.f32.mrb[14].mxu0 }
 0x30a   : > { %v1890_v17 = vpop.f32.mrb[15].mxu0 }
 0x30f   : > { %v2747_v18 = vpop.f32.mrb[16].mxu0 }
 0x310   : > { %v1901_v19 = vpop.f32.mrb[17].mxu0  ;;  %v1052_v20 = vsel %vm510_vm3, %v2747_v18, -inf }
 0x311   : > { %1053 = vmax.xlane.f32.xlu1 %v1052_v20  ;;  %v1049_v21 = vpop.f32.mrb[18].mxu0  ;;  %v559_v46 = vpop.xlane.xlu0 %558 }
 0x312   : > { %v1902_v22 = vpop.f32.mrb[19].mxu0  ;;  %v560_v47 = vsub.f32 %v551_v61, %v559_v46 }
 0x314   : > { %v561_v48 = vmul.f32 1.442695, %v560_v47 }
 0x316   : > { %2085 = vpow2.f32 %v561_v48 }
 0x317   : > { %v2751_v25 = vpop.f32.mrb[20].mxu0 }
 0x318   : > { %v1913_v27 = vpop.f32.mrb[21].mxu0  ;;  %v1176_v28 = vsel %vm510_vm3, %v2751_v25, -inf }
 0x319   : > { %1177 = vmax.xlane.f32.xlu0 %v1176_v28  ;;  %v1173_v29 = vpop.f32.mrb[22].mxu0 }
 0x31a   : > { %v1914_v30 = vpop.f32.mrb[23].mxu0 }
 0x31f   : > { %v1294_v32 = vpop.f32.mrb[24].mxu0 }
 0x320   : > { %v1925_v34 = vpop.f32.mrb[25].mxu0  ;;  %v1300_v36 = vsel %vm510_vm3, %v1294_v32, -inf  ;;  %v2764_v50 = vpop.eup %2085 }
 0x321   : > { %1301 = vmax.xlane.f32.xlu1 %v1300_v36  ;;  %v1297_v38 = vpop.f32.mrb[26].mxu0  ;;  %v563_v51 = vsel %vm510_vm3, %v2764_v50, 0.0 }
 0x322   : > { %v1926_v40 = vpop.f32.mrb[27].mxu0 }
 0x327   : > { %v2756_v41 = vpop.f32.mrb[28].mxu0 }
 0x328   : > { %v1937_v42 = vpop.f32.mrb[29].mxu0  ;;  %v1424_v49 = vsel %vm510_vm3, %v2756_v41, -inf }
 0x329   : > { %v1421_v43 = vpop.f32.mrb[30].mxu0 }
 0x32a   : > { %v1938_v44 = vpop.f32.mrb[31].mxu0 }
 0x32f   : > { %692 = vrot.lane.b32.xlu0 %v2682_v26, %s2357_s12 }
 0x332   : > { %572 = vrot.lane.b32.xlu1 %v1738_v45, %s2358_s19 }
 0x34e   : > { %1425 = vmax.xlane.f32.xlu0 %v1424_v49 }
 0x356   : > { %564 = vadd.xlane.f32.xlu1 %v563_v51 }
 0x386   : > { %v682_v26 = vpop.xlane.xlu1 %681 }
 0x387   : > { %v683_v52 = vsub.f32 %v674_v3, %v682_v26 }
 0x389   : > { %v684_v53 = vmul.f32 1.442695, %v683_v52 }
 0x38b   : > { %2087 = vpow2.f32 %v684_v53 }
 0x38e   : > { %v806_v23 = vpop.xlane.xlu0 %805 }
 0x38f   : > { %v807_v54 = vsub.f32 %v798_v8, %v806_v23 }
 0x391   : > { %v808_v55 = vmul.f32 1.442695, %v807_v54 }
 0x393   : > { %2089 = vpow2.f32 %v808_v55 }
 0x395   : > { %v2768_v56 = vpop.eup %2087 }
 0x396   : > { %v686_v57 = vsel %vm510_vm3, %v2768_v56, 0.0  ;;  %v930_v63 = vpop.xlane.xlu0 %929 }
 0x397   : > { %687 = vadd.xlane.f32.xlu0 %v686_v57  ;;  %v931_v2 = vsub.f32 %v2743_v13, %v930_v63 }
 0x399   : > { %v932_v3 = vmul.f32 1.442695, %v931_v2 }
 0x39b   : > { %2091 = vpow2.f32 %v932_v3 }
 0x39d   : > { %v2772_v58 = vpop.eup %2089 }
 0x39e   : > { %v810_v59 = vsel %vm510_vm3, %v2772_v58, 0.0  ;;  %v1054_v60 = vpop.xlane.xlu1 %1053 }
 0x39f   : > { %811 = vadd.xlane.f32.xlu1 %v810_v59  ;;  %v1055_v4 = vsub.f32 %v2747_v18, %v1054_v60 }
 0x3a1   : > { %v1056_v6 = vmul.f32 1.442695, %v1055_v4 }
 0x3a3   : > { %2093 = vpow2.f32 %v1056_v6 }
 0x3a5   : > { %v2785_v9 = vpop.eup %2091 }
 0x3a6   : > { %v1178_v5 = vpop.xlane.xlu0 %1177  ;;  %v934_v10 = vsel %vm510_vm3, %v2785_v9, 0.0 }
 0x3aa   : > { %v693_v17 = vpop.permute.xlu0 %692 }
 0x3ad   : > { %816 = vrot.lane.b32.xlu0 %v2678_v24, %s2359_s26  ;;  %v1179_v24 = vsub.f32 %v2751_v25, %v1178_v5  ;;  %v2789_v11 = vpop.eup %2093 }
 0x3ae   : > { %v1302_v61 = vpop.xlane.xlu1 %1301  ;;  %v1058_v13 = vsel %vm510_vm3, %v2789_v11, 0.0 }
 0x3af   : > { %v1303_v7 = vsub.f32 %v1294_v32, %v1302_v61 }
 0x3b0   : > { %940 = vrot.lane.b32.xlu1 %v2688_v31, %s2360_s13  ;;  %v1180_v31 = vmul.f32 1.442695, %v1179_v24 }
 0x3b1   : > { %v1304_v8 = vmul.f32 1.442695, %v1303_v7 }
 0x3b2   : > { %v573_v62 = vpop.permute.xlu1 %572  ;;  %2095 = vpow2.f32 %v1180_v31 }
 0x3b3   : > { %v579_v1 = vsel %vm577_vm4, %v573_v62, 0  ;;  %2097 = vpow2.f32 %v1304_v8 }
 0x3b4   : > { %1856 = vmatpush3.bf16.msra.mxu1 %v579_v1 }
 0x3b5   : > { %1867 = vmatprep.subr.bf16.mxu1 %v2348_v0 }
 0x3bc   : > { %v2791_v12 = vpop.eup %2095 }
 0x3bd   : > { %v2795_v14 = vpop.eup %2097  ;;  %v1182_v15 = vsel %vm510_vm3, %v2791_v12, 0.0 }
 0x3be   : > { %v1306_v16 = vsel %vm510_vm3, %v2795_v14, 0.0 }
 0x3cc   : > { %935 = vadd.xlane.f32.xlu0 %v934_v10 }
 0x3d0   : > { %1059 = vadd.xlane.f32.xlu0 %v1058_v13 }
 0x3d4   : > { %1183 = vadd.xlane.f32.xlu1 %v1182_v15  ;;  %1307 = vadd.xlane.f32.xlu0 %v1306_v16 }
 0x3db   : > { %v1426_v18 = vpop.xlane.xlu0 %1425 }
 0x3dc   : > { %v1427_v19 = vsub.f32 %v2756_v41, %v1426_v18 }
 0x3de   : > { %v1428_v20 = vmul.f32 1.442695, %v1427_v19 }
 0x3e0   : > { %2099 = vpow2.f32 %v1428_v20 }
 0x3e3   : > { %v565_v21 = vpop.xlane.xlu1 %564 }
 0x3e4   : > { %2101 = vrcp.f32 %v565_v21 }
 0x3e5   : > { %1188 = vrot.lane.b32.xlu1 %v2696_v35, %s2361_s9  ;;  %v698_v35 = vsel %vm577_vm4, %v693_v17, 0 }
 0x3e9   : > { %1312 = vrot.lane.b32.xlu1 %v2699_v37, %s2362_s20 }
 0x3ea   : > { %v2806_v22 = vpop.eup %2099 }
 0x3eb   : > { %v1430_v25 = vsel %vm510_vm3, %v2806_v22, 0.0 }
 0x3ec   : > { %1431 = vadd.xlane.f32.xlu0 %v1430_v25 }
 0x3ed   : > { %1436 = vrot.lane.b32.xlu1 %v2702_v39, %s2363_s29 }
 0x3ee   : > { %v2102_v27 = vpop.eup %2101 }
 0x3ef   : > { %v567_v28 = vmul.f32 %v2102_v27, %v2764_v50 }
 0x3f1   : > { %v568_v29 = vpack.c.bf16 %v567_v28, %v567_v28  ;;  %v2081_v28 = vld [vmem:[#allocation13] sm:$0xff]  }
 0x3f2   : > { %1946 = vmatpush3.bf16.msra.mxu0 %v2081_v28 }
 0x3f3   : > { %1858 = vmatmul.mubr.msk.bf16.vlgmr.msra.gmra.mrb[8].mxu1 %vm510_vm3, %v568_v29  ;;  %v2082_v29 = vld [vmem:[#allocation13 + $0x8] sm:$0xff]   ;;  %1947 = vmatprep.subr.bf16.mxu0 %v2348_v0 }
 0x3f4   : > { %1868 = vmatpush3.bf16.msra.mxu1 %v698_v35  ;;  %1869 = vmatprep.mubr.msk.bf16.mxu1 %vm2349_vm0, %v2348_v0 }
 0x3f5   : > { %1879 = vmatprep.subr.bf16.mxu1 %v2348_v0 }
 0x3f6   : > { %1948 = vmatpush3.bf16.msra.mxu0 %v2082_v29 }
 0x3f7   : > { %1949 = vmatprep.subr.bf16.mxu0 %v2348_v0 }
 0x402   : > { %1064 = vrot.lane.b32.xlu0 %v2693_v33, %s2364_s7 }
 0x424   : > { %v688_v37 = vpop.xlane.xlu0 %687 }
 0x425   : > { %2103 = vrcp.f32 %v688_v37 }
 0x428   : > { %v817_v34 = vpop.permute.xlu0 %816 }
 0x429   : > { %v822_v38 = vsel %vm577_vm4, %v817_v34, 0  ;;  %v2084_v34 = vld [vmem:[#allocation13 + $0x18] sm:$0xff]  }
 0x42c   : > { %v812_v39 = vpop.xlane.xlu1 %811 }
 0x42d   : > { %2105 = vrcp.f32 %v812_v39 }
 0x42f   : > { %v2104_v30 = vpop.eup %2103 }
 0x430   : > { %v690_v32 = vmul.f32 %v2104_v30, %v2768_v56  ;;  %v941_v41 = vpop.permute.xlu1 %940 }
 0x431   : > { %v946_v43 = vsel %vm577_vm4, %v941_v41, 0 }
 0x432   : > { %v691_v36 = vpack.c.bf16 %v690_v32, %v690_v32  ;;  %v2083_v32 = vld [vmem:[#allocation13 + $0x10] sm:$0xff]  }
 0x433   : > { %1950 = vmatpush3.bf16.msra.mxu0 %v2083_v32 }
 0x434   : > { %1870 = vmatmul.mubr.msk.bf16.vlgmr.msra.gmra.mrb[12].mxu1 %vm510_vm3, %v691_v36  ;;  %1951 = vmatprep.subr.bf16.mxu0 %v2348_v0 }
 0x435   : > { %1880 = vmatpush3.bf16.msra.mxu1 %v822_v38  ;;  %1881 = vmatprep.mubr.msk.bf16.mxu1 %vm2349_vm0, %v2348_v0 }
 0x436   : > { %1891 = vmatprep.subr.bf16.mxu1 %v2348_v0 }
 0x437   : > { %v2106_v33 = vpop.eup %2105  ;;  %1952 = vmatpush3.bf16.msra.mxu0 %v2084_v34 }
 0x438   : > { %v814_v40 = vmul.f32 %v2106_v33, %v2772_v58 }
 0x43a   : > { %v815_v42 = vpack.c.bf16 %v814_v40, %v814_v40 }
 0x43c   : > { %1882 = vmatmul.mubr.msk.bf16.vlgmr.msra.gmra.mrb[16].mxu1 %vm510_vm3, %v815_v42 }
 0x43d   : > { %1892 = vmatpush3.bf16.msra.mxu1 %v946_v43  ;;  %1893 = vmatprep.mubr.msk.bf16.mxu1 %vm2349_vm0, %v2348_v0 }
 0x43e   : > { %1903 = vmatprep.subr.bf16.mxu1 %v2348_v0 }
 0x459   : > { %v936_v44 = vpop.xlane.xlu0 %935 }
 0x45a   : > { %2107 = vrcp.f32 %v936_v44 }
 0x45d   : > { %v1060_v48 = vpop.xlane.xlu0 %1059 }
 0x45e   : > { %2109 = vrcp.f32 %v1060_v48 }
 0x461   : > { %v1184_v49 = vpop.xlane.xlu1 %1183  ;;  %v1308_v50 = vpop.xlane.xlu0 %1307 }
 0x462   : > { %2111 = vrcp.f32 %v1184_v49 }
 0x463   : > { %2113 = vrcp.f32 %v1308_v50 }
 0x464   : > { %v2108_v45 = vpop.eup %2107 }
 0x465   : > { %v938_v46 = vmul.f32 %v2108_v45, %v2785_v9  ;;  %v1189_v54 = vpop.permute.xlu1 %1188 }
 0x466   : > { %v1194_v57 = vsel %vm577_vm4, %v1189_v54, 0 }
 0x467   : > { %v939_v47 = vpack.c.bf16 %v938_v46, %v938_v46 }
 0x468   : > { %v2110_v51 = vpop.eup %2109 }
 0x469   : > { %1894 = vmatmul.mubr.msk.bf16.vlgmr.msra.gmra.mrb[20].mxu1 %vm510_vm3, %v939_v47  ;;  %v1062_v52 = vmul.f32 %v2110_v51, %v2789_v11  ;;  %v1313_v59 = vpop.permute.xlu1 %1312 }
 0x46a   : > { %1905 = vmatprep.mubr.msk.bf16.mxu1 %vm2349_vm0, %v2348_v0  ;;  %v1318_v62 = vsel %vm577_vm4, %v1313_v59, 0 }
 0x46b   : > { %v1063_v55 = vpack.c.bf16 %v1062_v52, %v1062_v52  ;;  %v1768_v52 = vld [vmem:[%s2927_s5] ss:$0 sm:$0xff] }
 0x46c   : > { %v2112_v56 = vpop.eup %2111 }
 0x46d   : > { %v1186_v58 = vmul.f32 %v2112_v56, %v2791_v12  ;;  %v2114_v61 = vpop.eup %2113  ;;  %v1437_v1 = vpop.permute.xlu1 %1436 }
 0x46e   : > { %v1310_v63 = vmul.f32 %v2114_v61, %v2795_v14  ;;  %v1442_v4 = vsel %vm577_vm4, %v1437_v1, 0 }
 0x46f   : > { %v1187_v60 = vpack.c.bf16 %v1186_v58, %v1186_v58 }
 0x470   : > { %v1311_v2 = vpack.c.bf16 %v1310_v63, %v1310_v63 }
 0x479   : > { %v1432_v26 = vpop.xlane.xlu0 %1431 }
 0x47a   : > { %2115 = vrcp.f32 %v1432_v26 }
 0x47d   : > { %v1065_v53 = vpop.permute.xlu0 %1064 }
 0x47e   : > { %v1070_v23 = vsel %vm577_vm4, %v1065_v53, 0 }
 0x47f   : > { %1904 = vmatpush3.bf16.msra.mxu1 %v1070_v23 }
 0x480   : > { %1915 = vmatprep.subr.bf16.mxu1 %v2348_v0 }
 0x482   : > { %1906 = vmatmul.mubr.msk.bf16.vlgmr.msra.gmra.mrb[24].mxu1 %vm510_vm3, %v1063_v55 }
 0x483   : > { %1916 = vmatpush3.bf16.msra.mxu1 %v1194_v57  ;;  %1917 = vmatprep.mubr.msk.bf16.mxu1 %vm2349_vm0, %v2348_v0 }
 0x484   : > { %1927 = vmatprep.subr.bf16.mxu1 %v2348_v0  ;;  %v2116_v3 = vpop.eup %2115 }
 0x485   : > { %v1434_v5 = vmul.f32 %v2116_v3, %v2806_v22 }
 0x487   : > { %v1435_v24 = vpack.c.bf16 %v1434_v5, %v1434_v5 }
 0x48a   : > { %1918 = vmatmul.mubr.msk.bf16.vlgmr.msra.gmra.mrb[28].mxu1 %vm510_vm3, %v1187_v60 }
 0x48b   : > { %1928 = vmatpush3.bf16.msra.mxu1 %v1318_v62  ;;  %1929 = vmatprep.mubr.msk.bf16.mxu1 %vm2349_vm0, %v2348_v0 }
 0x48c   : > { %1939 = vmatprep.subr.bf16.mxu1 %v2348_v0 }
 0x492   : > { %1930 = vmatmul.mubr.msk.bf16.vlgmr.msra.gmra.mrb[32].mxu1 %vm510_vm3, %v1311_v2 }
 0x493   : > { %1940 = vmatpush3.bf16.msra.mxu1 %v1442_v4  ;;  %1941 = vmatprep.mubr.msk.bf16.mxu1 %vm2349_vm0, %v2348_v0 }
 0x49a   : > { %1942 = vmatmul.mubr.msk.bf16.vlgmr.msra.gmra.mrb[36].mxu1 %vm510_vm3, %v1435_v24 }
 0x4c6   : > { %v615_v6 = vpop.f32.mrb[8].mxu1 }
 0x4c7   : > { %621 = vst.msk [vmem:[#allocation4] sm:$0xff] %vm510_vm3, %v615_v6  ;;  %v1859_v7 = vpop.f32.mrb[9].mxu1 }
 0x4c8   : > { %v618_v31 = vpop.f32.mrb[10].mxu1 }
 0x4c9   : > { %v1860_v8 = vpop.f32.mrb[11].mxu1 }
 0x507   : > { %v734_v9 = vpop.f32.mrb[12].mxu1 }
 0x508   : > { %741 = vrot.lane.b32.xlu1 %v734_v9, %s2363_s29  ;;  %v1871_v10 = vpop.f32.mrb[13].mxu1 }
 0x509   : > { %v737_v11 = vpop.f32.mrb[14].mxu1 }
 0x50a   : > { %v1872_v12 = vpop.f32.mrb[15].mxu1 }
 0x50f   : > { %v858_v13 = vpop.f32.mrb[16].mxu1 }
 0x510   : > { %865 = vrot.lane.b32.xlu1 %v858_v13, %s2362_s20  ;;  %v1883_v14 = vpop.f32.mrb[17].mxu1 }
 0x511   : > { %v861_v15 = vpop.f32.mrb[18].mxu1 }
 0x512   : > { %v1884_v16 = vpop.f32.mrb[19].mxu1 }
 0x53c   : > { %v982_v17 = vpop.f32.mrb[20].mxu1 }
 0x53d   : > { %989 = vrot.lane.b32.xlu0 %v982_v17, %s2361_s9  ;;  %v1895_v18 = vpop.f32.mrb[21].mxu1 }
 0x53e   : > { %v985_v19 = vpop.f32.mrb[22].mxu1 }
 0x53f   : > { %v1896_v20 = vpop.f32.mrb[23].mxu1 }
 0x555   : > { %v1106_v21 = vpop.f32.mrb[24].mxu1 }
 0x556   : > { %1113 = vrot.lane.b32.xlu1 %v1106_v21, %s2364_s7  ;;  %v1907_v22 = vpop.f32.mrb[25].mxu1 }
 0x557   : > { %v1109_v25 = vpop.f32.mrb[26].mxu1 }
 0x558   : > { %v1908_v27 = vpop.f32.mrb[27].mxu1 }
 0x55d   : > { %v1230_v35 = vpop.f32.mrb[28].mxu1 }
 0x55e   : > { %1237 = vrot.lane.b32.xlu0 %v1230_v35, %s2360_s13  ;;  %v1919_v37 = vpop.f32.mrb[29].mxu1 }
 0x55f   : > { %v1233_v39 = vpop.f32.mrb[30].mxu1 }
 0x560   : > { %v1920_v30 = vpop.f32.mrb[31].mxu1 }
 0x565   : > { %v1354_v36 = vpop.f32.mrb[32].mxu1 }
 0x566   : > { %1361 = vrot.lane.b32.xlu1 %v1354_v36, %s2359_s26  ;;  %v1931_v38 = vpop.f32.mrb[33].mxu1 }
 0x567   : > { %v1357_v33 = vpop.f32.mrb[34].mxu1 }
 0x568   : > { %v1932_v40 = vpop.f32.mrb[35].mxu1 }
 0x56d   : > { %v1478_v41 = vpop.f32.mrb[36].mxu1 }
 0x56e   : > { %1485 = vrot.lane.b32.xlu0 %v1478_v41, %s2357_s12  ;;  %v1943_v42 = vpop.f32.mrb[37].mxu1  ;;  %s2365_s12 = smov [#allocation14]  }
 0x56f   : > { %v1481_v43 = vpop.f32.mrb[38].mxu1  ;;  %s2265_s19 = sshll.u32 %s2365_s12, 4  ;;  %s2266_s19 = int_to_ptr.vmem [resolvable:$false] %s2265_s19 }
 0x570   : > { %v1944_v44 = vpop.f32.mrb[39].mxu1  ;;  %s2267_s26 = scalar_lea.vmem %s2266_s19, 256  ;;  %p2268_p0 = scmp.lt.s32.totalorder %s2879_s16, %s2266_s19 }
 0x571   : > { %p2269_p8 = scmp.lt.s32.totalorder %s2267_s26, %s2261_s4 }
 0x573   : > { %p2270_p6 = por %p2269_p8, %p2268_p0 }
 0x575   : > { %p2271_p10 = pnand %p2270_p6, %p2264_p4 }
 0x57a   : > { %v742_v45 = vpop.permute.xlu1 %741 }
 0x57b   : > { %745 = vst.msk [vmem:[#allocation4] sm:$0xff] %vm744_vm5, %v742_v45 }
 0x582   : > { %v866_v46 = vpop.permute.xlu1 %865 }
 0x583   : > { %869 = vst.msk [vmem:[#allocation4] sm:$0xff] %vm868_vm6, %v866_v46 }
 0x5af   : > { %v990_v0 = vpop.permute.xlu0 %989 }
 0x5b0   : > { %993 = vst.msk [vmem:[#allocation4] sm:$0xff] %vm992_vm7, %v990_v0 }
 0x5c8   : > { %v1114_v47 = vpop.permute.xlu1 %1113 }
 0x5c9   : > { %1117 = vst.msk [vmem:[#allocation4] sm:$0xff] %vm1116_vm8, %v1114_v47 }
 0x5d0   : > { %v1238_v48 = vpop.permute.xlu0 %1237 }
 0x5d1   : > { %1241 = vst.msk [vmem:[#allocation4] sm:$0xff] %vm1240_vm9, %v1238_v48 }
 0x5d8   : > { %v1362_v49 = vpop.permute.xlu1 %1361 }
 0x5d9   : > { %1365 = vst.msk [vmem:[#allocation4] sm:$0xff] %vm1364_vm10, %v1362_v49 }
 0x5e0   : > { %v1486_v50 = vpop.permute.xlu0 %1485 }
 0x5e1   : > { %1489 = vst.msk [vmem:[#allocation4] sm:$0xff] %vm1488_vm11, %v1486_v50 }
 0x5e8   : > { %v1490_v51 = vld [vmem:[#allocation4] sm:$0xff] }
 0x5e9   : > { %v1491_v26 = vpack.c.bf16 %v1490_v51, %v1490_v51 }
 0x5eb   : > { %1954 = vmatmul.mubr.msk.bf16.vlgmr.msra.gmra.mrb[32].mxu0 %vm384_vm1, %v1491_v26 }
 0x6be   : > { %v1568_v53 = vpop.f32.mrb[32].mxu0 }
 0x6bf   : > { %v1569_v23 = vadd.f32 %v1768_v52, %v1568_v53  ;;  %v1955_v54 = vpop.f32.mrb[33].mxu0 }
 0x6c0   : > { %v1571_v55 = vpop.f32.mrb[34].mxu0 }
 0x6c1   : > { %v1956_v56 = vpop.f32.mrb[35].mxu0  ;;  %1574 = vst.msk [vmem:[%s346_s30] sm:$0xff] %vm384_vm1, %v1569_v23 }
 0x6c2   : > { %2274 = shalt.err (!%p2271_p10)
}
 0x6c3   : > { %s2275_s2 = scalar_lea.hbm %s2877_s3, 128  ;;  %s2279_s20 = scalar_lea.hbm %s2928_s6, 256 }
 0x6c4   : > { %p2276_p13 = scmp.ne.s32.totalorder %s2877_s3, %s2275_s2  ;;  %p2280_p9 = scmp.lt.u32.totalorder %s2877_s3, %s2928_s6 }
 0x6c5   : > { %p2281_p3 = scmp.lt.u32.totalorder %s2279_s20, %s2275_s2  ;;  %p2283_p12 = scmp.lt.u32.totalorder %s2275_s2, %s2877_s3 }
 0x6c6   : > { %p2277_p5 = pnand %p2276_p13, %p2953_p1 }
 0x6c7   : > { %p2282_p7 = por %p2281_p3, %p2280_p9 }
 0x6c8   : > { %p2278_p11 = pneg %p2277_p5 }
 0x6c9   : > { %p2284_p2 = por %p2283_p12, %p2282_p7 }
 0x6cb   : > { %p2285_p4 = pnand %p2284_p2, %p2278_p11 }
 0x6cd   : > { %2288 = shalt.err (!%p2285_p4)
}
 0x6ce   : > { %1973 = dma.vmem_to_hbm [thread:$0]  (%p2953_p1), %s2879_s16, 128, %s2877_s3, %s1576_s25  }
 0x6cf PF: > { %s1601_s8 = sand.u32 1, %s2327_s21   ;;  %p2954_p0 = scmp.ne.s32.totalorder %s2937_s28, 0 }
 0x6d0   : > { %p2955_p8 = scmp.ge.s32.totalorder %s2339_s24, 2  ;;  %s1602_s27 = scalar_lea.sflag [#allocation7], %s1601_s8 }
 0x6d2   : > { %p1993_p6 = pnand %p2955_p8, %p2954_p0 }
 0x6d4   : > { %2322 = dma.done.wait (!%p1993_p6), %s1602_s27, 128  }
 0x6d5   : > { %2324 = vsyncadd (!%p1993_p6), %s1602_s27, 4294967168  ;;  %p23_p10 = scmp.ge.s32.totalorder %s2541_s18, 4   ;;  %s2956_s21 = smov %s2331_s22 }
 0x6d6   : > { %s2957_s22 = smov %s2335_s23  ;;  %s2958_s23 = smov %s2551_s14 }
 0x6d7   : > { %s2959_s24 = smov %s2541_s18  ;;  %25 = sbr.rel (!%p23_p10) target bundleno = 12 (0xc), region = 114 }
 0x6de   :  { %1607 = vsyncpa [#allocation6], 1 }
 0x6df   :  { %1609 = vsyncpa [#allocation6 + $0x1], 1 }
 0x6e0   :  { %1610 = vsyncpa [#allocation9], 1 }
 0x6e1   :  { %1612 = vsyncpa [#allocation9 + $0x1], 1 }
 0x6e2   :  { %1613 = vsyncpa [#allocation12], 1 }
 0x6e3   :  { %1614 = vsyncpa [#allocation7], 1 }
 0x6e4   :  { %1616 = vsyncpa [#allocation7 + $0x1], 1 }

</bundles_post_ra>
